<compile_context>
chip_gen: v6e
topology: v6e:2x2x1
jax: 0.10.0
libtpu: 0.0.40
codegen_flags: <defaults>
</compile_context>

<pallas_src>
import jax
import jax.numpy as jnp
from jax.experimental import pallas as pl
from jax.experimental.pallas import tpu as pltpu


def _make_lstm_kernel(seq_len, batch, hid_dim, class_num, hid_num):
    T, B, H = seq_len, batch, hid_dim
    G = 4 * H  # fused gate width, order [c, i, f, o]

    def kernel(tok_ref, table_ref, wh_ref, wfcb_ref, out_ref):
        # tok_ref   : (T*B,)        int32   SMEM   token id at row t*B + b
        # table_ref : (VOCAB, 1, G) float32 VMEM   pre-folded  emb @ Wx + b
        # wh_ref    : (H, G)        bfloat16 VMEM  h-side gate weights
        # wfcb_ref  : (H + 8, G)    float32 VMEM   rows 0:H = Wfc (lane-padded),
        #                                          row H    = bfc (lane-padded)
        # out_ref   : (B, T*H + G)  float32 VMEM   [ cat(h_t) | y (padded) ]
        Wh = wh_ref[...]  # resident across the whole recurrence

        def gather_xg(t):
            # Per-step x-side gate pre-activations: pure row gather (x @ Wx + b
            # was folded into the table in the wrapper).  Independent of h, so
            # it overlaps with the previous step's recurrent math.
            rows = [table_ref[tok_ref[t * B + bi]] for bi in range(B)]  # (1, G)
            return jnp.concatenate(rows, axis=0)                        # (B, G)

        def cell(xg, h, c):
            # Single fused (B,H)x(H,4H) MXU matmul in bf16, f32 accumulation.
            g = xg + jnp.dot(h.astype(jnp.bfloat16), Wh,
                             preferred_element_type=jnp.float32)        # (B, G)
            # Full-width EUP calls (one tanh, one sigmoid over the whole vreg),
            # then cheap lane-group selects.
            tg = jnp.tanh(g)
            sg = jax.nn.sigmoid(g)
            ctilde = tg[:, 0:H]
            i_t = sg[:, H:2 * H]
            f_t = sg[:, 2 * H:3 * H]
            o_t = g[:, 3 * H:4 * H]          # NO sigmoid, per the reference
            c_new = i_t * ctilde + f_t * c
            h_new = o_t * jnp.tanh(c_new)
            return h_new, c_new

        h = jnp.zeros((B, H), jnp.float32)
        c = jnp.zeros((B, H), jnp.float32)
        for t in range(T):                   # T is small & static: unrolled
            xg = gather_xg(t)
            if t == 0:
                # Reference restarts from (h0, c0) = 0 on every inner "layer"
                # iteration at t == 0, so one step from zeros is exactly
                # equivalent to hid_num restarts from zeros.
                h, c = cell(xg, h, c)
            else:
                # Reference re-applies the layer-0 weights hid_num times on the
                # same x (x-projection hoisted: xg reused).
                for _ in range(hid_num):
                    h, c = cell(xg, h, c)
            # Stream this step's hidden state straight into the output slab
            # (uses the otherwise idle vector-store slot; no tail concatenate).
            out_ref[:, t * H:(t + 1) * H] = h

        # fc1 on the final hidden state, written into the lane-aligned 128-wide
        # tail of the same output slab (bias folded in via the packed operand).
        y_full = (jnp.dot(h, wfcb_ref[0:H, :], preferred_element_type=jnp.float32)
                  + wfcb_ref[H:H + 1, :])
        out_ref[:, T * H:] = y_full

    return kernel


def lstm_forward(tokens, emb_table, W, b, Wfc, bfc, hid_num):
    T, B = tokens.shape
    V, H = emb_table.shape
    C = Wfc.shape[1]
    G = 4 * H

    # Split / permute recurrent weights into gate order [c, i, f, o].
    Wx = jnp.concatenate(
        [W[:, 0:H], W[:, 2 * H:3 * H], W[:, 4 * H:5 * H], W[:, 6 * H:7 * H]], axis=1)
    Wh = jnp.concatenate(
        [W[:, H:2 * H], W[:, 3 * H:4 * H], W[:, 5 * H:6 * H], W[:, 7 * H:8 * H]], axis=1)

    # Pre-fold the x-side projection and bias into the embedding table (f32,
    # one tiny one-time XLA matmul): in-kernel x work becomes a row gather.
    table_proj = (emb_table @ Wx + b).reshape(V, 1, G).astype(jnp.float32)

    # Recurrent weights as bf16 MXU operands (f32 accumulation in-kernel).
    Wh_bf16 = Wh.astype(jnp.bfloat16)

    # Pack fc1 weight + bias into one lane-padded operand: rows 0:H = Wfc,
    # row H = bfc, everything zero-padded to 4H=128 lanes -> dense y store.
    Wfcb = jnp.zeros((H + 8, G), jnp.float32)
    Wfcb = Wfcb.at[:H, :C].set(Wfc)
    Wfcb = Wfcb.at[H, :C].set(bfc[0])

    tokens_flat = tokens.reshape(-1).astype(jnp.int32)   # row t*B + b

    kernel = _make_lstm_kernel(T, B, H, C, hid_num)
    out_full = pl.pallas_call(
        kernel,
        out_shape=jax.ShapeDtypeStruct((B, T * H + G), jnp.float32),
        in_specs=[
            pl.BlockSpec(memory_space=pltpu.MemorySpace.SMEM),   # tokens
            pl.BlockSpec(memory_space=pltpu.MemorySpace.VMEM),   # table_proj
            pl.BlockSpec(memory_space=pltpu.MemorySpace.VMEM),   # Wh (bf16)
            pl.BlockSpec(memory_space=pltpu.MemorySpace.VMEM),   # Wfc+bfc packed
        ],
        out_specs=pl.BlockSpec(memory_space=pltpu.MemorySpace.VMEM),
    )(tokens_flat, table_proj, Wh_bf16, Wfcb)

    out = out_full[:, :T * H]          # torch.cat(out, 1) layout: (B, T*H)
    y = out_full[:, T * H:T * H + C]   # fc1 logits: (B, C)
    return y, out


def lstm_forward_ref(tokens, emb_table, W, b, Wfc, bfc, hid_num):
    """Pure-JAX replica of the PyTorch forward (for correctness check)."""
    x = jnp.take(emb_table, tokens, axis=0)  # (T, B, H)
    T, B, H = x.shape

    def step(xi, h, c):
        zc = xi @ W[:, 0:H] + h @ W[:, H:2 * H] + b[:, 0:H]
        ctilde = jnp.tanh(zc)
        zi = xi @ W[:, 2 * H:3 * H] + h @ W[:, 3 * H:4 * H] + b[:, H:2 * H]
        i_t = jax.nn.sigmoid(zi)
        zf = xi @ W[:, 4 * H:5 * H] + h @ W[:, 5 * H:6 * H] + b[:, 2 * H:3 * H]
        f_t = jax.nn.sigmoid(zf)
        c_new = i_t * ctilde + f_t * c
        o_t = xi @ W[:, 6 * H:7 * H] + h @ W[:, 7 * H:8 * H] + b[:, 3 * H:4 * H]
        h_new = o_t * jnp.tanh(c_new)
        return h_new, c_new

    h = jnp.zeros((B, H), jnp.float32)
    c = jnp.zeros((B, H), jnp.float32)
    outs = []
    for t in range(T):
        xi = x[t]
        if t == 0:
            for _ in range(hid_num):
                h, c = step(xi, jnp.zeros((B, H)), jnp.zeros((B, H)))
        else:
            for _ in range(hid_num):
                h, c = step(xi, h, c)
        outs.append(h)
    out = jnp.concatenate(outs, axis=1)
    y = h @ Wfc + bfc
    return y, out


if __name__ == "__main__":
    # Small config implied by the module: emb_size == hid_dim.
    VOCAB = 50
    HID = 32          # emb_size == hid_dim
    HID_NUM = 2
    NCLASS = 8
    T, B = 8, 2

    key = jax.random.PRNGKey(0)
    k_tok, k_emb, k_w, k_fcw, k_fcb = jax.random.split(key, 5)

    tokens = jax.random.randint(k_tok, (T, B), 0, VOCAB, dtype=jnp.int32)
    emb_table = jax.random.normal(k_emb, (VOCAB, HID), dtype=jnp.float32)
    W = jax.random.normal(k_w, (HID, 8 * HID), dtype=jnp.float32) * 0.01
    b = jnp.zeros((1, 4 * HID), dtype=jnp.float32)
    Wfc = jax.random.normal(k_fcw, (HID, NCLASS), dtype=jnp.float32) * (1.0 / HID ** 0.5)
    bfc = jax.random.normal(k_fcb, (1, NCLASS), dtype=jnp.float32) * 0.01

    y, out = lstm_forward(tokens, emb_table, W, b, Wfc, bfc, HID_NUM)
    y = jax.block_until_ready(y)
    out = jax.block_until_ready(out)

    y_ref, out_ref = lstm_forward_ref(tokens, emb_table, W, b, Wfc, bfc, HID_NUM)
    assert y.shape == (B, NCLASS) and out.shape == (B, T * HID)
    assert jnp.allclose(y, y_ref, atol=1e-3, rtol=1e-3)
    assert jnp.allclose(out, out_ref, atol=1e-3, rtol=1e-3)

    print("KERNEL_OK")
</pallas_src>

<mosaic_0001>
module attributes {stable_mosaic.version = 11 : i64} {
  func.func @kernel(%arg0: memref<16xi32, #tpu.memory_space<smem>>, %arg1: memref<50x1x128xf32, #tpu.memory_space<vmem>>, %arg2: memref<32x128xbf16, #tpu.memory_space<vmem>>, %arg3: memref<40x128xf32, #tpu.memory_space<vmem>>, %arg4: memref<2x384xf32, #tpu.memory_space<vmem>>) attributes {dimension_semantics = [], scalar_prefetch = 0 : i64, scratch_operands = 0 : i64, tpu.core_type = #tpu.core_type<tc>} {
    %c0 = arith.constant 0 : index
    %c0_0 = arith.constant 0 : index
    %0 = vector.load %arg2[%c0, %c0_0] : memref<32x128xbf16, #tpu.memory_space<vmem>>, vector<32x128xbf16>
    %cst = arith.constant 0.000000e+00 : f32
    %1 = vector.broadcast %cst : f32 to vector<2x32xf32>
    %cst_1 = arith.constant 0.000000e+00 : f32
    %2 = vector.broadcast %cst_1 : f32 to vector<2x32xf32>
    %c0_2 = arith.constant 0 : index
    %3 = memref.load %arg0[%c0_2] : memref<16xi32, #tpu.memory_space<smem>>
    %4 = arith.index_cast %3 : i32 to index
    %c0_3 = arith.constant 0 : index
    %c0_4 = arith.constant 0 : index
    %5 = vector.load %arg1[%4, %c0_3, %c0_4] : memref<50x1x128xf32, #tpu.memory_space<vmem>>, vector<1x1x128xf32>
    %6 = vector.shape_cast %5 : vector<1x1x128xf32> to vector<1x128xf32>
    %c1 = arith.constant 1 : index
    %7 = memref.load %arg0[%c1] : memref<16xi32, #tpu.memory_space<smem>>
    %8 = arith.index_cast %7 : i32 to index
    %c0_5 = arith.constant 0 : index
    %c0_6 = arith.constant 0 : index
    %9 = vector.load %arg1[%8, %c0_5, %c0_6] : memref<50x1x128xf32, #tpu.memory_space<vmem>>, vector<1x1x128xf32>
    %10 = vector.shape_cast %9 : vector<1x1x128xf32> to vector<1x128xf32>
    %11 = tpu.concatenate %6, %10 in 0 : vector<1x128xf32>, vector<1x128xf32> -> vector<2x128xf32>
    %12 = arith.truncf %1 : vector<2x32xf32> to vector<2x32xbf16>
    %cst_7 = arith.constant dense<0.000000e+00> : vector<2x128xf32>
    %13 = tpu.matmul %12, %0, %cst_7 {dimension_numbers = #tpu.dot_dimension_numbers<[1], [0], [0], [1], [0, 0, 1, 1], [], []>} : vector<2x32xbf16>, vector<32x128xbf16>, vector<2x128xf32> -> vector<2x128xf32>
    %14 = arith.addf %11, %13 : vector<2x128xf32>
    %15 = math.tanh %14 : vector<2x128xf32>
    %16 = arith.negf %14 : vector<2x128xf32>
    %17 = math.exp %16 : vector<2x128xf32>
    %cst_8 = arith.constant 1.000000e+00 : f32
    %18 = vector.broadcast %cst_8 : f32 to vector<2x128xf32>
    %19 = arith.addf %18, %17 : vector<2x128xf32>
    %20 = arith.divf %18, %19 : vector<2x128xf32>
    %21 = vector.extract_strided_slice %15 {offsets = [0, 0], sizes = [2, 32], strides = [1, 1]} : vector<2x128xf32> to vector<2x32xf32>
    %22 = vector.extract_strided_slice %20 {offsets = [0, 32], sizes = [2, 32], strides = [1, 1]} : vector<2x128xf32> to vector<2x32xf32>
    %23 = vector.extract_strided_slice %20 {offsets = [0, 64], sizes = [2, 32], strides = [1, 1]} : vector<2x128xf32> to vector<2x32xf32>
    %24 = vector.extract_strided_slice %14 {offsets = [0, 96], sizes = [2, 32], strides = [1, 1]} : vector<2x128xf32> to vector<2x32xf32>
    %25 = arith.mulf %22, %21 : vector<2x32xf32>
    %26 = arith.mulf %23, %2 : vector<2x32xf32>
    %27 = arith.addf %25, %26 : vector<2x32xf32>
    %28 = math.tanh %27 : vector<2x32xf32>
    %29 = arith.mulf %24, %28 : vector<2x32xf32>
    %c0_9 = arith.constant 0 : index
    %c0_10 = arith.constant 0 : index
    %30 = vector.load %arg4[%c0_9, %c0_10] : memref<2x384xf32, #tpu.memory_space<vmem>>, vector<2x32xf32>
    tpu.vector_store %arg4[%c0_9, %c0_10], %29 {strides = array<i32>} : memref<2x384xf32, #tpu.memory_space<vmem>>, vector<2x32xf32>,
    %c2 = arith.constant 2 : index
    %31 = memref.load %arg0[%c2] : memref<16xi32, #tpu.memory_space<smem>>
    %32 = arith.index_cast %31 : i32 to index
    %c0_11 = arith.constant 0 : index
    %c0_12 = arith.constant 0 : index
    %33 = vector.load %arg1[%32, %c0_11, %c0_12] : memref<50x1x128xf32, #tpu.memory_space<vmem>>, vector<1x1x128xf32>
    %34 = vector.shape_cast %33 : vector<1x1x128xf32> to vector<1x128xf32>
    %c3 = arith.constant 3 : index
    %35 = memref.load %arg0[%c3] : memref<16xi32, #tpu.memory_space<smem>>
    %36 = arith.index_cast %35 : i32 to index
    %c0_13 = arith.constant 0 : index
    %c0_14 = arith.constant 0 : index
    %37 = vector.load %arg1[%36, %c0_13, %c0_14] : memref<50x1x128xf32, #tpu.memory_space<vmem>>, vector<1x1x128xf32>
    %38 = vector.shape_cast %37 : vector<1x1x128xf32> to vector<1x128xf32>
    %39 = tpu.concatenate %34, %38 in 0 : vector<1x128xf32>, vector<1x128xf32> -> vector<2x128xf32>
    %40 = arith.truncf %29 : vector<2x32xf32> to vector<2x32xbf16>
    %cst_15 = arith.constant dense<0.000000e+00> : vector<2x128xf32>
    %41 = tpu.matmul %40, %0, %cst_15 {dimension_numbers = #tpu.dot_dimension_numbers<[1], [0], [0], [1], [0, 0, 1, 1], [], []>} : vector<2x32xbf16>, vector<32x128xbf16>, vector<2x128xf32> -> vector<2x128xf32>
    %42 = arith.addf %39, %41 : vector<2x128xf32>
    %43 = math.tanh %42 : vector<2x128xf32>
    %44 = arith.negf %42 : vector<2x128xf32>
    %45 = math.exp %44 : vector<2x128xf32>
    %cst_16 = arith.constant 1.000000e+00 : f32
    %46 = vector.broadcast %cst_16 : f32 to vector<2x128xf32>
    %47 = arith.addf %46, %45 : vector<2x128xf32>
    %48 = arith.divf %46, %47 : vector<2x128xf32>
    %49 = vector.extract_strided_slice %43 {offsets = [0, 0], sizes = [2, 32], strides = [1, 1]} : vector<2x128xf32> to vector<2x32xf32>
    %50 = vector.extract_strided_slice %48 {offsets = [0, 32], sizes = [2, 32], strides = [1, 1]} : vector<2x128xf32> to vector<2x32xf32>
    %51 = vector.extract_strided_slice %48 {offsets = [0, 64], sizes = [2, 32], strides = [1, 1]} : vector<2x128xf32> to vector<2x32xf32>
    %52 = vector.extract_strided_slice %42 {offsets = [0, 96], sizes = [2, 32], strides = [1, 1]} : vector<2x128xf32> to vector<2x32xf32>
    %53 = arith.mulf %50, %49 : vector<2x32xf32>
    %54 = arith.mulf %51, %27 : vector<2x32xf32>
    %55 = arith.addf %53, %54 : vector<2x32xf32>
    %56 = math.tanh %55 : vector<2x32xf32>
    %57 = arith.mulf %52, %56 : vector<2x32xf32>
    %58 = arith.truncf %57 : vector<2x32xf32> to vector<2x32xbf16>
    %cst_17 = arith.constant dense<0.000000e+00> : vector<2x128xf32>
    %59 = tpu.matmul %58, %0, %cst_17 {dimension_numbers = #tpu.dot_dimension_numbers<[1], [0], [0], [1], [0, 0, 1, 1], [], []>} : vector<2x32xbf16>, vector<32x128xbf16>, vector<2x128xf32> -> vector<2x128xf32>
    %60 = arith.addf %39, %59 : vector<2x128xf32>
    %61 = math.tanh %60 : vector<2x128xf32>
    %62 = arith.negf %60 : vector<2x128xf32>
    %63 = math.exp %62 : vector<2x128xf32>
    %cst_18 = arith.constant 1.000000e+00 : f32
    %64 = vector.broadcast %cst_18 : f32 to vector<2x128xf32>
    %65 = arith.addf %64, %63 : vector<2x128xf32>
    %66 = arith.divf %64, %65 : vector<2x128xf32>
    %67 = vector.extract_strided_slice %61 {offsets = [0, 0], sizes = [2, 32], strides = [1, 1]} : vector<2x128xf32> to vector<2x32xf32>
    %68 = vector.extract_strided_slice %66 {offsets = [0, 32], sizes = [2, 32], strides = [1, 1]} : vector<2x128xf32> to vector<2x32xf32>
    %69 = vector.extract_strided_slice %66 {offsets = [0, 64], sizes = [2, 32], strides = [1, 1]} : vector<2x128xf32> to vector<2x32xf32>
    %70 = vector.extract_strided_slice %60 {offsets = [0, 96], sizes = [2, 32], strides = [1, 1]} : vector<2x128xf32> to vector<2x32xf32>
    %71 = arith.mulf %68, %67 : vector<2x32xf32>
    %72 = arith.mulf %69, %55 : vector<2x32xf32>
    %73 = arith.addf %71, %72 : vector<2x32xf32>
    %74 = math.tanh %73 : vector<2x32xf32>
    %75 = arith.mulf %70, %74 : vector<2x32xf32>
    %c0_19 = arith.constant 0 : index
    %c32 = arith.constant 32 : index
    %76 = vector.load %arg4[%c0_19, %c32] : memref<2x384xf32, #tpu.memory_space<vmem>>, vector<2x32xf32>
    tpu.vector_store %arg4[%c0_19, %c32], %75 {strides = array<i32>} : memref<2x384xf32, #tpu.memory_space<vmem>>, vector<2x32xf32>,
    %c4 = arith.constant 4 : index
    %77 = memref.load %arg0[%c4] : memref<16xi32, #tpu.memory_space<smem>>
    %78 = arith.index_cast %77 : i32 to index
    %c0_20 = arith.constant 0 : index
    %c0_21 = arith.constant 0 : index
    %79 = vector.load %arg1[%78, %c0_20, %c0_21] : memref<50x1x128xf32, #tpu.memory_space<vmem>>, vector<1x1x128xf32>
    %80 = vector.shape_cast %79 : vector<1x1x128xf32> to vector<1x128xf32>
    %c5 = arith.constant 5 : index
    %81 = memref.load %arg0[%c5] : memref<16xi32, #tpu.memory_space<smem>>
    %82 = arith.index_cast %81 : i32 to index
    %c0_22 = arith.constant 0 : index
    %c0_23 = arith.constant 0 : index
    %83 = vector.load %arg1[%82, %c0_22, %c0_23] : memref<50x1x128xf32, #tpu.memory_space<vmem>>, vector<1x1x128xf32>
    %84 = vector.shape_cast %83 : vector<1x1x128xf32> to vector<1x128xf32>
    %85 = tpu.concatenate %80, %84 in 0 : vector<1x128xf32>, vector<1x128xf32> -> vector<2x128xf32>
    %86 = arith.truncf %75 : vector<2x32xf32> to vector<2x32xbf16>
    %cst_24 = arith.constant dense<0.000000e+00> : vector<2x128xf32>
    %87 = tpu.matmul %86, %0, %cst_24 {dimension_numbers = #tpu.dot_dimension_numbers<[1], [0], [0], [1], [0, 0, 1, 1], [], []>} : vector<2x32xbf16>, vector<32x128xbf16>, vector<2x128xf32> -> vector<2x128xf32>
    %88 = arith.addf %85, %87 : vector<2x128xf32>
    %89 = math.tanh %88 : vector<2x128xf32>
    %90 = arith.negf %88 : vector<2x128xf32>
    %91 = math.exp %90 : vector<2x128xf32>
    %cst_25 = arith.constant 1.000000e+00 : f32
    %92 = vector.broadcast %cst_25 : f32 to vector<2x128xf32>
    %93 = arith.addf %92, %91 : vector<2x128xf32>
    %94 = arith.divf %92, %93 : vector<2x128xf32>
    %95 = vector.extract_strided_slice %89 {offsets = [0, 0], sizes = [2, 32], strides = [1, 1]} : vector<2x128xf32> to vector<2x32xf32>
    %96 = vector.extract_strided_slice %94 {offsets = [0, 32], sizes = [2, 32], strides = [1, 1]} : vector<2x128xf32> to vector<2x32xf32>
    %97 = vector.extract_strided_slice %94 {offsets = [0, 64], sizes = [2, 32], strides = [1, 1]} : vector<2x128xf32> to vector<2x32xf32>
    %98 = vector.extract_strided_slice %88 {offsets = [0, 96], sizes = [2, 32], strides = [1, 1]} : vector<2x128xf32> to vector<2x32xf32>
    %99 = arith.mulf %96, %95 : vector<2x32xf32>
    %100 = arith.mulf %97, %73 : vector<2x32xf32>
    %101 = arith.addf %99, %100 : vector<2x32xf32>
    %102 = math.tanh %101 : vector<2x32xf32>
    %103 = arith.mulf %98, %102 : vector<2x32xf32>
    %104 = arith.truncf %103 : vector<2x32xf32> to vector<2x32xbf16>
    %cst_26 = arith.constant dense<0.000000e+00> : vector<2x128xf32>
    %105 = tpu.matmul %104, %0, %cst_26 {dimension_numbers = #tpu.dot_dimension_numbers<[1], [0], [0], [1], [0, 0, 1, 1], [], []>} : vector<2x32xbf16>, vector<32x128xbf16>, vector<2x128xf32> -> vector<2x128xf32>
    %106 = arith.addf %85, %105 : vector<2x128xf32>
    %107 = math.tanh %106 : vector<2x128xf32>
    %108 = arith.negf %106 : vector<2x128xf32>
    %109 = math.exp %108 : vector<2x128xf32>
    %cst_27 = arith.constant 1.000000e+00 : f32
    %110 = vector.broadcast %cst_27 : f32 to vector<2x128xf32>
    %111 = arith.addf %110, %109 : vector<2x128xf32>
    %112 = arith.divf %110, %111 : vector<2x128xf32>
    %113 = vector.extract_strided_slice %107 {offsets = [0, 0], sizes = [2, 32], strides = [1, 1]} : vector<2x128xf32> to vector<2x32xf32>
    %114 = vector.extract_strided_slice %112 {offsets = [0, 32], sizes = [2, 32], strides = [1, 1]} : vector<2x128xf32> to vector<2x32xf32>
    %115 = vector.extract_strided_slice %112 {offsets = [0, 64], sizes = [2, 32], strides = [1, 1]} : vector<2x128xf32> to vector<2x32xf32>
    %116 = vector.extract_strided_slice %106 {offsets = [0, 96], sizes = [2, 32], strides = [1, 1]} : vector<2x128xf32> to vector<2x32xf32>
    %117 = arith.mulf %114, %113 : vector<2x32xf32>
    %118 = arith.mulf %115, %101 : vector<2x32xf32>
    %119 = arith.addf %117, %118 : vector<2x32xf32>
    %120 = math.tanh %119 : vector<2x32xf32>
    %121 = arith.mulf %116, %120 : vector<2x32xf32>
    %c0_28 = arith.constant 0 : index
    %c64 = arith.constant 64 : index
    %122 = vector.load %arg4[%c0_28, %c64] : memref<2x384xf32, #tpu.memory_space<vmem>>, vector<2x32xf32>
    tpu.vector_store %arg4[%c0_28, %c64], %121 {strides = array<i32>} : memref<2x384xf32, #tpu.memory_space<vmem>>, vector<2x32xf32>,
    %c6 = arith.constant 6 : index
    %123 = memref.load %arg0[%c6] : memref<16xi32, #tpu.memory_space<smem>>
    %124 = arith.index_cast %123 : i32 to index
    %c0_29 = arith.constant 0 : index
    %c0_30 = arith.constant 0 : index
    %125 = vector.load %arg1[%124, %c0_29, %c0_30] : memref<50x1x128xf32, #tpu.memory_space<vmem>>, vector<1x1x128xf32>
    %126 = vector.shape_cast %125 : vector<1x1x128xf32> to vector<1x128xf32>
    %c7 = arith.constant 7 : index
    %127 = memref.load %arg0[%c7] : memref<16xi32, #tpu.memory_space<smem>>
    %128 = arith.index_cast %127 : i32 to index
    %c0_31 = arith.constant 0 : index
    %c0_32 = arith.constant 0 : index
    %129 = vector.load %arg1[%128, %c0_31, %c0_32] : memref<50x1x128xf32, #tpu.memory_space<vmem>>, vector<1x1x128xf32>
    %130 = vector.shape_cast %129 : vector<1x1x128xf32> to vector<1x128xf32>
    %131 = tpu.concatenate %126, %130 in 0 : vector<1x128xf32>, vector<1x128xf32> -> vector<2x128xf32>
    %132 = arith.truncf %121 : vector<2x32xf32> to vector<2x32xbf16>
    %cst_33 = arith.constant dense<0.000000e+00> : vector<2x128xf32>
    %133 = tpu.matmul %132, %0, %cst_33 {dimension_numbers = #tpu.dot_dimension_numbers<[1], [0], [0], [1], [0, 0, 1, 1], [], []>} : vector<2x32xbf16>, vector<32x128xbf16>, vector<2x128xf32> -> vector<2x128xf32>
    %134 = arith.addf %131, %133 : vector<2x128xf32>
    %135 = math.tanh %134 : vector<2x128xf32>
    %136 = arith.negf %134 : vector<2x128xf32>
    %137 = math.exp %136 : vector<2x128xf32>
    %cst_34 = arith.constant 1.000000e+00 : f32
    %138 = vector.broadcast %cst_34 : f32 to vector<2x128xf32>
    %139 = arith.addf %138, %137 : vector<2x128xf32>
    %140 = arith.divf %138, %139 : vector<2x128xf32>
    %141 = vector.extract_strided_slice %135 {offsets = [0, 0], sizes = [2, 32], strides = [1, 1]} : vector<2x128xf32> to vector<2x32xf32>
    %142 = vector.extract_strided_slice %140 {offsets = [0, 32], sizes = [2, 32], strides = [1, 1]} : vector<2x128xf32> to vector<2x32xf32>
    %143 = vector.extract_strided_slice %140 {offsets = [0, 64], sizes = [2, 32], strides = [1, 1]} : vector<2x128xf32> to vector<2x32xf32>
    %144 = vector.extract_strided_slice %134 {offsets = [0, 96], sizes = [2, 32], strides = [1, 1]} : vector<2x128xf32> to vector<2x32xf32>
    %145 = arith.mulf %142, %141 : vector<2x32xf32>
    %146 = arith.mulf %143, %119 : vector<2x32xf32>
    %147 = arith.addf %145, %146 : vector<2x32xf32>
    %148 = math.tanh %147 : vector<2x32xf32>
    %149 = arith.mulf %144, %148 : vector<2x32xf32>
    %150 = arith.truncf %149 : vector<2x32xf32> to vector<2x32xbf16>
    %cst_35 = arith.constant dense<0.000000e+00> : vector<2x128xf32>
    %151 = tpu.matmul %150, %0, %cst_35 {dimension_numbers = #tpu.dot_dimension_numbers<[1], [0], [0], [1], [0, 0, 1, 1], [], []>} : vector<2x32xbf16>, vector<32x128xbf16>, vector<2x128xf32> -> vector<2x128xf32>
    %152 = arith.addf %131, %151 : vector<2x128xf32>
    %153 = math.tanh %152 : vector<2x128xf32>
    %154 = arith.negf %152 : vector<2x128xf32>
    %155 = math.exp %154 : vector<2x128xf32>
    %cst_36 = arith.constant 1.000000e+00 : f32
    %156 = vector.broadcast %cst_36 : f32 to vector<2x128xf32>
    %157 = arith.addf %156, %155 : vector<2x128xf32>
    %158 = arith.divf %156, %157 : vector<2x128xf32>
    %159 = vector.extract_strided_slice %153 {offsets = [0, 0], sizes = [2, 32], strides = [1, 1]} : vector<2x128xf32> to vector<2x32xf32>
    %160 = vector.extract_strided_slice %158 {offsets = [0, 32], sizes = [2, 32], strides = [1, 1]} : vector<2x128xf32> to vector<2x32xf32>
    %161 = vector.extract_strided_slice %158 {offsets = [0, 64], sizes = [2, 32], strides = [1, 1]} : vector<2x128xf32> to vector<2x32xf32>
    %162 = vector.extract_strided_slice %152 {offsets = [0, 96], sizes = [2, 32], strides = [1, 1]} : vector<2x128xf32> to vector<2x32xf32>
    %163 = arith.mulf %160, %159 : vector<2x32xf32>
    %164 = arith.mulf %161, %147 : vector<2x32xf32>
    %165 = arith.addf %163, %164 : vector<2x32xf32>
    %166 = math.tanh %165 : vector<2x32xf32>
    %167 = arith.mulf %162, %166 : vector<2x32xf32>
    %c0_37 = arith.constant 0 : index
    %c96 = arith.constant 96 : index
    %168 = vector.load %arg4[%c0_37, %c96] : memref<2x384xf32, #tpu.memory_space<vmem>>, vector<2x32xf32>
    tpu.vector_store %arg4[%c0_37, %c96], %167 {strides = array<i32>} : memref<2x384xf32, #tpu.memory_space<vmem>>, vector<2x32xf32>,
    %c8 = arith.constant 8 : index
    %169 = memref.load %arg0[%c8] : memref<16xi32, #tpu.memory_space<smem>>
    %170 = arith.index_cast %169 : i32 to index
    %c0_38 = arith.constant 0 : index
    %c0_39 = arith.constant 0 : index
    %171 = vector.load %arg1[%170, %c0_38, %c0_39] : memref<50x1x128xf32, #tpu.memory_space<vmem>>, vector<1x1x128xf32>
    %172 = vector.shape_cast %171 : vector<1x1x128xf32> to vector<1x128xf32>
    %c9 = arith.constant 9 : index
    %173 = memref.load %arg0[%c9] : memref<16xi32, #tpu.memory_space<smem>>
    %174 = arith.index_cast %173 : i32 to index
    %c0_40 = arith.constant 0 : index
    %c0_41 = arith.constant 0 : index
    %175 = vector.load %arg1[%174, %c0_40, %c0_41] : memref<50x1x128xf32, #tpu.memory_space<vmem>>, vector<1x1x128xf32>
    %176 = vector.shape_cast %175 : vector<1x1x128xf32> to vector<1x128xf32>
    %177 = tpu.concatenate %172, %176 in 0 : vector<1x128xf32>, vector<1x128xf32> -> vector<2x128xf32>
    %178 = arith.truncf %167 : vector<2x32xf32> to vector<2x32xbf16>
    %cst_42 = arith.constant dense<0.000000e+00> : vector<2x128xf32>
    %179 = tpu.matmul %178, %0, %cst_42 {dimension_numbers = #tpu.dot_dimension_numbers<[1], [0], [0], [1], [0, 0, 1, 1], [], []>} : vector<2x32xbf16>, vector<32x128xbf16>, vector<2x128xf32> -> vector<2x128xf32>
    %180 = arith.addf %177, %179 : vector<2x128xf32>
    %181 = math.tanh %180 : vector<2x128xf32>
    %182 = arith.negf %180 : vector<2x128xf32>
    %183 = math.exp %182 : vector<2x128xf32>
    %cst_43 = arith.constant 1.000000e+00 : f32
    %184 = vector.broadcast %cst_43 : f32 to vector<2x128xf32>
    %185 = arith.addf %184, %183 : vector<2x128xf32>
    %186 = arith.divf %184, %185 : vector<2x128xf32>
    %187 = vector.extract_strided_slice %181 {offsets = [0, 0], sizes = [2, 32], strides = [1, 1]} : vector<2x128xf32> to vector<2x32xf32>
    %188 = vector.extract_strided_slice %186 {offsets = [0, 32], sizes = [2, 32], strides = [1, 1]} : vector<2x128xf32> to vector<2x32xf32>
    %189 = vector.extract_strided_slice %186 {offsets = [0, 64], sizes = [2, 32], strides = [1, 1]} : vector<2x128xf32> to vector<2x32xf32>
    %190 = vector.extract_strided_slice %180 {offsets = [0, 96], sizes = [2, 32], strides = [1, 1]} : vector<2x128xf32> to vector<2x32xf32>
    %191 = arith.mulf %188, %187 : vector<2x32xf32>
    %192 = arith.mulf %189, %165 : vector<2x32xf32>
    %193 = arith.addf %191, %192 : vector<2x32xf32>
    %194 = math.tanh %193 : vector<2x32xf32>
    %195 = arith.mulf %190, %194 : vector<2x32xf32>
    %196 = arith.truncf %195 : vector<2x32xf32> to vector<2x32xbf16>
    %cst_44 = arith.constant dense<0.000000e+00> : vector<2x128xf32>
    %197 = tpu.matmul %196, %0, %cst_44 {dimension_numbers = #tpu.dot_dimension_numbers<[1], [0], [0], [1], [0, 0, 1, 1], [], []>} : vector<2x32xbf16>, vector<32x128xbf16>, vector<2x128xf32> -> vector<2x128xf32>
    %198 = arith.addf %177, %197 : vector<2x128xf32>
    %199 = math.tanh %198 : vector<2x128xf32>
    %200 = arith.negf %198 : vector<2x128xf32>
    %201 = math.exp %200 : vector<2x128xf32>
    %cst_45 = arith.constant 1.000000e+00 : f32
    %202 = vector.broadcast %cst_45 : f32 to vector<2x128xf32>
    %203 = arith.addf %202, %201 : vector<2x128xf32>
    %204 = arith.divf %202, %203 : vector<2x128xf32>
    %205 = vector.extract_strided_slice %199 {offsets = [0, 0], sizes = [2, 32], strides = [1, 1]} : vector<2x128xf32> to vector<2x32xf32>
    %206 = vector.extract_strided_slice %204 {offsets = [0, 32], sizes = [2, 32], strides = [1, 1]} : vector<2x128xf32> to vector<2x32xf32>
    %207 = vector.extract_strided_slice %204 {offsets = [0, 64], sizes = [2, 32], strides = [1, 1]} : vector<2x128xf32> to vector<2x32xf32>
    %208 = vector.extract_strided_slice %198 {offsets = [0, 96], sizes = [2, 32], strides = [1, 1]} : vector<2x128xf32> to vector<2x32xf32>
    %209 = arith.mulf %206, %205 : vector<2x32xf32>
    %210 = arith.mulf %207, %193 : vector<2x32xf32>
    %211 = arith.addf %209, %210 : vector<2x32xf32>
    %212 = math.tanh %211 : vector<2x32xf32>
    %213 = arith.mulf %208, %212 : vector<2x32xf32>
    %c0_46 = arith.constant 0 : index
    %c128 = arith.constant 128 : index
    %214 = vector.load %arg4[%c0_46, %c128] : memref<2x384xf32, #tpu.memory_space<vmem>>, vector<2x32xf32>
    tpu.vector_store %arg4[%c0_46, %c128], %213 {strides = array<i32>} : memref<2x384xf32, #tpu.memory_space<vmem>>, vector<2x32xf32>,
    %c10 = arith.constant 10 : index
    %215 = memref.load %arg0[%c10] : memref<16xi32, #tpu.memory_space<smem>>
    %216 = arith.index_cast %215 : i32 to index
    %c0_47 = arith.constant 0 : index
    %c0_48 = arith.constant 0 : index
    %217 = vector.load %arg1[%216, %c0_47, %c0_48] : memref<50x1x128xf32, #tpu.memory_space<vmem>>, vector<1x1x128xf32>
    %218 = vector.shape_cast %217 : vector<1x1x128xf32> to vector<1x128xf32>
    %c11 = arith.constant 11 : index
    %219 = memref.load %arg0[%c11] : memref<16xi32, #tpu.memory_space<smem>>
    %220 = arith.index_cast %219 : i32 to index
    %c0_49 = arith.constant 0 : index
    %c0_50 = arith.constant 0 : index
    %221 = vector.load %arg1[%220, %c0_49, %c0_50] : memref<50x1x128xf32, #tpu.memory_space<vmem>>, vector<1x1x128xf32>
    %222 = vector.shape_cast %221 : vector<1x1x128xf32> to vector<1x128xf32>
    %223 = tpu.concatenate %218, %222 in 0 : vector<1x128xf32>, vector<1x128xf32> -> vector<2x128xf32>
    %224 = arith.truncf %213 : vector<2x32xf32> to vector<2x32xbf16>
    %cst_51 = arith.constant dense<0.000000e+00> : vector<2x128xf32>
    %225 = tpu.matmul %224, %0, %cst_51 {dimension_numbers = #tpu.dot_dimension_numbers<[1], [0], [0], [1], [0, 0, 1, 1], [], []>} : vector<2x32xbf16>, vector<32x128xbf16>, vector<2x128xf32> -> vector<2x128xf32>
    %226 = arith.addf %223, %225 : vector<2x128xf32>
    %227 = math.tanh %226 : vector<2x128xf32>
    %228 = arith.negf %226 : vector<2x128xf32>
    %229 = math.exp %228 : vector<2x128xf32>
    %cst_52 = arith.constant 1.000000e+00 : f32
    %230 = vector.broadcast %cst_52 : f32 to vector<2x128xf32>
    %231 = arith.addf %230, %229 : vector<2x128xf32>
    %232 = arith.divf %230, %231 : vector<2x128xf32>
    %233 = vector.extract_strided_slice %227 {offsets = [0, 0], sizes = [2, 32], strides = [1, 1]} : vector<2x128xf32> to vector<2x32xf32>
    %234 = vector.extract_strided_slice %232 {offsets = [0, 32], sizes = [2, 32], strides = [1, 1]} : vector<2x128xf32> to vector<2x32xf32>
    %235 = vector.extract_strided_slice %232 {offsets = [0, 64], sizes = [2, 32], strides = [1, 1]} : vector<2x128xf32> to vector<2x32xf32>
    %236 = vector.extract_strided_slice %226 {offsets = [0, 96], sizes = [2, 32], strides = [1, 1]} : vector<2x128xf32> to vector<2x32xf32>
    %237 = arith.mulf %234, %233 : vector<2x32xf32>
    %238 = arith.mulf %235, %211 : vector<2x32xf32>
    %239 = arith.addf %237, %238 : vector<2x32xf32>
    %240 = math.tanh %239 : vector<2x32xf32>
    %241 = arith.mulf %236, %240 : vector<2x32xf32>
    %242 = arith.truncf %241 : vector<2x32xf32> to vector<2x32xbf16>
    %cst_53 = arith.constant dense<0.000000e+00> : vector<2x128xf32>
    %243 = tpu.matmul %242, %0, %cst_53 {dimension_numbers = #tpu.dot_dimension_numbers<[1], [0], [0], [1], [0, 0, 1, 1], [], []>} : vector<2x32xbf16>, vector<32x128xbf16>, vector<2x128xf32> -> vector<2x128xf32>
    %244 = arith.addf %223, %243 : vector<2x128xf32>
    %245 = math.tanh %244 : vector<2x128xf32>
    %246 = arith.negf %244 : vector<2x128xf32>
    %247 = math.exp %246 : vector<2x128xf32>
    %cst_54 = arith.constant 1.000000e+00 : f32
    %248 = vector.broadcast %cst_54 : f32 to vector<2x128xf32>
    %249 = arith.addf %248, %247 : vector<2x128xf32>
    %250 = arith.divf %248, %249 : vector<2x128xf32>
    %251 = vector.extract_strided_slice %245 {offsets = [0, 0], sizes = [2, 32], strides = [1, 1]} : vector<2x128xf32> to vector<2x32xf32>
    %252 = vector.extract_strided_slice %250 {offsets = [0, 32], sizes = [2, 32], strides = [1, 1]} : vector<2x128xf32> to vector<2x32xf32>
    %253 = vector.extract_strided_slice %250 {offsets = [0, 64], sizes = [2, 32], strides = [1, 1]} : vector<2x128xf32> to vector<2x32xf32>
    %254 = vector.extract_strided_slice %244 {offsets = [0, 96], sizes = [2, 32], strides = [1, 1]} : vector<2x128xf32> to vector<2x32xf32>
    %255 = arith.mulf %252, %251 : vector<2x32xf32>
    %256 = arith.mulf %253, %239 : vector<2x32xf32>
    %257 = arith.addf %255, %256 : vector<2x32xf32>
    %258 = math.tanh %257 : vector<2x32xf32>
    %259 = arith.mulf %254, %258 : vector<2x32xf32>
    %c0_55 = arith.constant 0 : index
    %c160 = arith.constant 160 : index
    %260 = vector.load %arg4[%c0_55, %c160] : memref<2x384xf32, #tpu.memory_space<vmem>>, vector<2x32xf32>
    tpu.vector_store %arg4[%c0_55, %c160], %259 {strides = array<i32>} : memref<2x384xf32, #tpu.memory_space<vmem>>, vector<2x32xf32>,
    %c12 = arith.constant 12 : index
    %261 = memref.load %arg0[%c12] : memref<16xi32, #tpu.memory_space<smem>>
    %262 = arith.index_cast %261 : i32 to index
    %c0_56 = arith.constant 0 : index
    %c0_57 = arith.constant 0 : index
    %263 = vector.load %arg1[%262, %c0_56, %c0_57] : memref<50x1x128xf32, #tpu.memory_space<vmem>>, vector<1x1x128xf32>
    %264 = vector.shape_cast %263 : vector<1x1x128xf32> to vector<1x128xf32>
    %c13 = arith.constant 13 : index
    %265 = memref.load %arg0[%c13] : memref<16xi32, #tpu.memory_space<smem>>
    %266 = arith.index_cast %265 : i32 to index
    %c0_58 = arith.constant 0 : index
    %c0_59 = arith.constant 0 : index
    %267 = vector.load %arg1[%266, %c0_58, %c0_59] : memref<50x1x128xf32, #tpu.memory_space<vmem>>, vector<1x1x128xf32>
    %268 = vector.shape_cast %267 : vector<1x1x128xf32> to vector<1x128xf32>
    %269 = tpu.concatenate %264, %268 in 0 : vector<1x128xf32>, vector<1x128xf32> -> vector<2x128xf32>
    %270 = arith.truncf %259 : vector<2x32xf32> to vector<2x32xbf16>
    %cst_60 = arith.constant dense<0.000000e+00> : vector<2x128xf32>
    %271 = tpu.matmul %270, %0, %cst_60 {dimension_numbers = #tpu.dot_dimension_numbers<[1], [0], [0], [1], [0, 0, 1, 1], [], []>} : vector<2x32xbf16>, vector<32x128xbf16>, vector<2x128xf32> -> vector<2x128xf32>
    %272 = arith.addf %269, %271 : vector<2x128xf32>
    %273 = math.tanh %272 : vector<2x128xf32>
    %274 = arith.negf %272 : vector<2x128xf32>
    %275 = math.exp %274 : vector<2x128xf32>
    %cst_61 = arith.constant 1.000000e+00 : f32
    %276 = vector.broadcast %cst_61 : f32 to vector<2x128xf32>
    %277 = arith.addf %276, %275 : vector<2x128xf32>
    %278 = arith.divf %276, %277 : vector<2x128xf32>
    %279 = vector.extract_strided_slice %273 {offsets = [0, 0], sizes = [2, 32], strides = [1, 1]} : vector<2x128xf32> to vector<2x32xf32>
    %280 = vector.extract_strided_slice %278 {offsets = [0, 32], sizes = [2, 32], strides = [1, 1]} : vector<2x128xf32> to vector<2x32xf32>
    %281 = vector.extract_strided_slice %278 {offsets = [0, 64], sizes = [2, 32], strides = [1, 1]} : vector<2x128xf32> to vector<2x32xf32>
    %282 = vector.extract_strided_slice %272 {offsets = [0, 96], sizes = [2, 32], strides = [1, 1]} : vector<2x128xf32> to vector<2x32xf32>
    %283 = arith.mulf %280, %279 : vector<2x32xf32>
    %284 = arith.mulf %281, %257 : vector<2x32xf32>
    %285 = arith.addf %283, %284 : vector<2x32xf32>
    %286 = math.tanh %285 : vector<2x32xf32>
    %287 = arith.mulf %282, %286 : vector<2x32xf32>
    %288 = arith.truncf %287 : vector<2x32xf32> to vector<2x32xbf16>
    %cst_62 = arith.constant dense<0.000000e+00> : vector<2x128xf32>
    %289 = tpu.matmul %288, %0, %cst_62 {dimension_numbers = #tpu.dot_dimension_numbers<[1], [0], [0], [1], [0, 0, 1, 1], [], []>} : vector<2x32xbf16>, vector<32x128xbf16>, vector<2x128xf32> -> vector<2x128xf32>
    %290 = arith.addf %269, %289 : vector<2x128xf32>
    %291 = math.tanh %290 : vector<2x128xf32>
    %292 = arith.negf %290 : vector<2x128xf32>
    %293 = math.exp %292 : vector<2x128xf32>
    %cst_63 = arith.constant 1.000000e+00 : f32
    %294 = vector.broadcast %cst_63 : f32 to vector<2x128xf32>
    %295 = arith.addf %294, %293 : vector<2x128xf32>
    %296 = arith.divf %294, %295 : vector<2x128xf32>
    %297 = vector.extract_strided_slice %291 {offsets = [0, 0], sizes = [2, 32], strides = [1, 1]} : vector<2x128xf32> to vector<2x32xf32>
    %298 = vector.extract_strided_slice %296 {offsets = [0, 32], sizes = [2, 32], strides = [1, 1]} : vector<2x128xf32> to vector<2x32xf32>
    %299 = vector.extract_strided_slice %296 {offsets = [0, 64], sizes = [2, 32], strides = [1, 1]} : vector<2x128xf32> to vector<2x32xf32>
    %300 = vector.extract_strided_slice %290 {offsets = [0, 96], sizes = [2, 32], strides = [1, 1]} : vector<2x128xf32> to vector<2x32xf32>
    %301 = arith.mulf %298, %297 : vector<2x32xf32>
    %302 = arith.mulf %299, %285 : vector<2x32xf32>
    %303 = arith.addf %301, %302 : vector<2x32xf32>
    %304 = math.tanh %303 : vector<2x32xf32>
    %305 = arith.mulf %300, %304 : vector<2x32xf32>
    %c0_64 = arith.constant 0 : index
    %c192 = arith.constant 192 : index
    %306 = vector.load %arg4[%c0_64, %c192] : memref<2x384xf32, #tpu.memory_space<vmem>>, vector<2x32xf32>
    tpu.vector_store %arg4[%c0_64, %c192], %305 {strides = array<i32>} : memref<2x384xf32, #tpu.memory_space<vmem>>, vector<2x32xf32>,
    %c14 = arith.constant 14 : index
    %307 = memref.load %arg0[%c14] : memref<16xi32, #tpu.memory_space<smem>>
    %308 = arith.index_cast %307 : i32 to index
    %c0_65 = arith.constant 0 : index
    %c0_66 = arith.constant 0 : index
    %309 = vector.load %arg1[%308, %c0_65, %c0_66] : memref<50x1x128xf32, #tpu.memory_space<vmem>>, vector<1x1x128xf32>
    %310 = vector.shape_cast %309 : vector<1x1x128xf32> to vector<1x128xf32>
    %c15 = arith.constant 15 : index
    %311 = memref.load %arg0[%c15] : memref<16xi32, #tpu.memory_space<smem>>
    %312 = arith.index_cast %311 : i32 to index
    %c0_67 = arith.constant 0 : index
    %c0_68 = arith.constant 0 : index
    %313 = vector.load %arg1[%312, %c0_67, %c0_68] : memref<50x1x128xf32, #tpu.memory_space<vmem>>, vector<1x1x128xf32>
    %314 = vector.shape_cast %313 : vector<1x1x128xf32> to vector<1x128xf32>
    %315 = tpu.concatenate %310, %314 in 0 : vector<1x128xf32>, vector<1x128xf32> -> vector<2x128xf32>
    %316 = arith.truncf %305 : vector<2x32xf32> to vector<2x32xbf16>
    %cst_69 = arith.constant dense<0.000000e+00> : vector<2x128xf32>
    %317 = tpu.matmul %316, %0, %cst_69 {dimension_numbers = #tpu.dot_dimension_numbers<[1], [0], [0], [1], [0, 0, 1, 1], [], []>} : vector<2x32xbf16>, vector<32x128xbf16>, vector<2x128xf32> -> vector<2x128xf32>
    %318 = arith.addf %315, %317 : vector<2x128xf32>
    %319 = math.tanh %318 : vector<2x128xf32>
    %320 = arith.negf %318 : vector<2x128xf32>
    %321 = math.exp %320 : vector<2x128xf32>
    %cst_70 = arith.constant 1.000000e+00 : f32
    %322 = vector.broadcast %cst_70 : f32 to vector<2x128xf32>
    %323 = arith.addf %322, %321 : vector<2x128xf32>
    %324 = arith.divf %322, %323 : vector<2x128xf32>
    %325 = vector.extract_strided_slice %319 {offsets = [0, 0], sizes = [2, 32], strides = [1, 1]} : vector<2x128xf32> to vector<2x32xf32>
    %326 = vector.extract_strided_slice %324 {offsets = [0, 32], sizes = [2, 32], strides = [1, 1]} : vector<2x128xf32> to vector<2x32xf32>
    %327 = vector.extract_strided_slice %324 {offsets = [0, 64], sizes = [2, 32], strides = [1, 1]} : vector<2x128xf32> to vector<2x32xf32>
    %328 = vector.extract_strided_slice %318 {offsets = [0, 96], sizes = [2, 32], strides = [1, 1]} : vector<2x128xf32> to vector<2x32xf32>
    %329 = arith.mulf %326, %325 : vector<2x32xf32>
    %330 = arith.mulf %327, %303 : vector<2x32xf32>
    %331 = arith.addf %329, %330 : vector<2x32xf32>
    %332 = math.tanh %331 : vector<2x32xf32>
    %333 = arith.mulf %328, %332 : vector<2x32xf32>
    %334 = arith.truncf %333 : vector<2x32xf32> to vector<2x32xbf16>
    %cst_71 = arith.constant dense<0.000000e+00> : vector<2x128xf32>
    %335 = tpu.matmul %334, %0, %cst_71 {dimension_numbers = #tpu.dot_dimension_numbers<[1], [0], [0], [1], [0, 0, 1, 1], [], []>} : vector<2x32xbf16>, vector<32x128xbf16>, vector<2x128xf32> -> vector<2x128xf32>
    %336 = arith.addf %315, %335 : vector<2x128xf32>
    %337 = math.tanh %336 : vector<2x128xf32>
    %338 = arith.negf %336 : vector<2x128xf32>
    %339 = math.exp %338 : vector<2x128xf32>
    %cst_72 = arith.constant 1.000000e+00 : f32
    %340 = vector.broadcast %cst_72 : f32 to vector<2x128xf32>
    %341 = arith.addf %340, %339 : vector<2x128xf32>
    %342 = arith.divf %340, %341 : vector<2x128xf32>
    %343 = vector.extract_strided_slice %337 {offsets = [0, 0], sizes = [2, 32], strides = [1, 1]} : vector<2x128xf32> to vector<2x32xf32>
    %344 = vector.extract_strided_slice %342 {offsets = [0, 32], sizes = [2, 32], strides = [1, 1]} : vector<2x128xf32> to vector<2x32xf32>
    %345 = vector.extract_strided_slice %342 {offsets = [0, 64], sizes = [2, 32], strides = [1, 1]} : vector<2x128xf32> to vector<2x32xf32>
    %346 = vector.extract_strided_slice %336 {offsets = [0, 96], sizes = [2, 32], strides = [1, 1]} : vector<2x128xf32> to vector<2x32xf32>
    %347 = arith.mulf %344, %343 : vector<2x32xf32>
    %348 = arith.mulf %345, %331 : vector<2x32xf32>
    %349 = arith.addf %347, %348 : vector<2x32xf32>
    %350 = math.tanh %349 : vector<2x32xf32>
    %351 = arith.mulf %346, %350 : vector<2x32xf32>
    %c0_73 = arith.constant 0 : index
    %c224 = arith.constant 224 : index
    %352 = vector.load %arg4[%c0_73, %c224] : memref<2x384xf32, #tpu.memory_space<vmem>>, vector<2x32xf32>
    tpu.vector_store %arg4[%c0_73, %c224], %351 {strides = array<i32>} : memref<2x384xf32, #tpu.memory_space<vmem>>, vector<2x32xf32>,
    %c0_74 = arith.constant 0 : index
    %c0_75 = arith.constant 0 : index
    %353 = vector.load %arg3[%c0_74, %c0_75] : memref<40x128xf32, #tpu.memory_space<vmem>>, vector<32x128xf32>
    %cst_76 = arith.constant dense<0.000000e+00> : vector<2x128xf32>
    %354 = tpu.matmul %351, %353, %cst_76 {dimension_numbers = #tpu.dot_dimension_numbers<[1], [0], [0], [1], [0, 0, 1, 1], [], []>} : vector<2x32xf32>, vector<32x128xf32>, vector<2x128xf32> -> vector<2x128xf32>
    %c32_77 = arith.constant 32 : index
    %c0_78 = arith.constant 0 : index
    %355 = vector.load %arg3[%c32_77, %c0_78] : memref<40x128xf32, #tpu.memory_space<vmem>>, vector<1x128xf32>
    %356 = vector.broadcast %355 : vector<1x128xf32> to vector<2x128xf32>
    %357 = arith.addf %354, %356 : vector<2x128xf32>
    %c0_79 = arith.constant 0 : index
    %c256 = arith.constant 256 : index
    %358 = vector.load %arg4[%c0_79, %c256] : memref<2x384xf32, #tpu.memory_space<vmem>>, vector<2x128xf32>
    tpu.vector_store %arg4[%c0_79, %c256], %357 {strides = array<i32>} : memref<2x384xf32, #tpu.memory_space<vmem>>, vector<2x128xf32>,
    return
  }
}

</mosaic_0001>

<bundles_post_ra>
// kernel: tpu_custom_call.1
= control target key start
LH: loop header
LB: loop body
LE: loop exit
PB: predicated region body
PF: predicated region fallthrough
CT: control target
= control target key end

     0   :  { %9 = vsyncpa [#allocation5], 0  ;;  %s2294_s0 = inlined_call_operand.hbm [shape: s32[16], index: 0, kind: input, shape index: {}]   ;;  %s2295_s1 = inlined_call_operand.hbm [shape: f32[50,1,128], index: 1, kind: input, shape index: {}]   ;;  %s2296_s2 = inlined_call_operand.hbm [shape: bf16[32,128], index: 2, kind: input, shape index: {}]   ;;  %s2297_s3 = inlined_call_operand.hbm [shape: f32[40,128], index: 3, kind: input, shape index: {}]   ;;  %s2298_s4 = inlined_call_operand.hbm [shape: f32[2,384], index: 4, kind: output, shape index: {}]  }
   0x1   :  { %10 = vsyncpa [#allocation3], 0 }
   0x2   :  { %11 = vsyncpa [#allocation8], 0 }
   0x3   :  { %12 = vsyncpa [#allocation4], 0  ;;  %s1993_s15 = smov [#allocation7]  }
   0x4   :  { %s38_s16 = sshll.u32 %s1993_s15, 4  ;;  %s39_s16 = int_to_ptr.vmem [resolvable:$true] %s38_s16 }
   0x5   :  { %s1905_s17 = scalar_lea.vmem %s39_s16, 256  ;;  %p1910_p1 = scmp.lt.s32.totalorder %s39_s16, %s39_s16 }
   0x6   :  { %p1906_p0 = scmp.ne.s32.totalorder %s39_s16, %s1905_s17  ;;  %p1911_p2 = scmp.lt.s32.totalorder %s1905_s17, %s1905_s17 }
   0x8   :  { %p1912_p3 = por %p1911_p2, %p1910_p1 }
   0xa   :  { %p1913_p4 = pnand %p1912_p3, %p1906_p0 }
   0xc   :  { %1916 = shalt.err (!%p1913_p4)
}
   0xd   :  { %s1994_s18 = smov 64   ;;  %s1995_s19 = smov 4  }
   0xe   :  { %44 = dma.hbm_to_vmem [thread:$0]  %s2296_s2, 256, %s39_s16, [#allocation8], %s1994_s18, %s1994_s18, %s1995_s19  }
   0xf   :  { %s1996_s22 = smov [#allocation2]   ;;  %s1997_s25 = smov [#allocation6]  }
  0x10   :  { %20 = dma.hbm_to_smem %s2294_s0, 16, %s1996_s22, [#allocation5]  }
  0x11   :  { %s26_s26 = sshll.u32 %s1997_s25, 4  ;;  %s27_s26 = int_to_ptr.vmem [resolvable:$true] %s26_s26 }
  0x12   :  { %s1933_s27 = scalar_lea.vmem %s27_s26, 800  ;;  %p1938_p6 = scmp.lt.s32.totalorder %s27_s26, %s27_s26 }
  0x13   :  { %p1934_p5 = scmp.ne.s32.totalorder %s27_s26, %s1933_s27  ;;  %p1939_p7 = scmp.lt.s32.totalorder %s1933_s27, %s1933_s27 }
  0x15   :  { %p1940_p8 = por %p1939_p7, %p1938_p6 }
  0x17   :  { %p1941_p9 = pnand %p1940_p8, %p1934_p5 }
  0x19   :  { %1944 = shalt.err (!%p1941_p9)
}
  0x1a   :  { %s1998_s28 = smov 16   ;;  %s1999_s29 = smov 1  }
  0x1b   :  { %32 = dma.hbm_to_vmem [thread:$0]  %s2295_s1, 800, %s27_s26, [#allocation3], %s1998_s28, %s1998_s28, %s1999_s29  }
  0x1c   :  { %s2000_s2 = smov [#allocation9]  }
  0x1d   :  { %s50_s6 = sshll.u32 %s2000_s2, 4  ;;  %s51_s6 = int_to_ptr.vmem [resolvable:$true] %s50_s6 }
  0x1e   :  { %s1953_s0 = scalar_lea.vmem %s51_s6, 640  ;;  %p1958_p11 = scmp.lt.s32.totalorder %s51_s6, %s51_s6 }
  0x1f   :  { %p1954_p10 = scmp.ne.s32.totalorder %s51_s6, %s1953_s0  ;;  %p1959_p12 = scmp.lt.s32.totalorder %s1953_s0, %s1953_s0 }
  0x21   :  { %p1960_p13 = por %p1959_p12, %p1958_p11 }
  0x23   :  { %p1961_p0 = pnand %p1960_p13, %p1954_p10 }
  0x25   :  { %1964 = shalt.err (!%p1961_p0)
}
  0x26   :  { %s2001_s7 = smov 128   ;;  %s2002_s8 = smov 8  }
  0x27   :  { %56 = dma.hbm_to_vmem [thread:$0]  %s2297_s3, 640, %s51_s6, [#allocation8], %s2001_s7, %s2001_s7, %s2002_s8  }
  0x28   :  { %1985 = dma.done.wait [#allocation5], 16  }
  0x29   :  { %1986 = vsyncadd [#allocation5], 4294967280 }
  0x2a   :  { %1987 = dma.done.wait [#allocation3], 800  }
  0x2b   :  { %1988 = vsyncadd [#allocation3], 4294966496 }
  0x2c   :  { %1989 = dma.done.wait [#allocation8], 896  }
  0x2d   :  { %1990 = vsyncadd [#allocation8], 4294966400 }
  0x2e   :  { %69 = sfence }
  0x2f   :  { %v2049_v0 = vld [vmem:[#allocation7 + $0x8] sm:$0xff]   ;;  %v2003_v1 = vmov 0.0   ;;  %v2054_v2 = vld [vmem:[#allocation7] sm:$0xff]   ;;  %vm2004_vm0 = vmmov 0   ;;  %v2005_v3 = vmov 0   ;;  %s75_s1 = sld [smem:[#allocation2]] }
  0x30   :  { %1627 = vmatprep.subr.bf16.mxu0 %v2003_v1  ;;  %1635 = vmatprep.subr.bf16.mxu1 %v2003_v1  ;;  %s1521_s3 = sld [smem:[#allocation2 + $0x1]]  ;;  %vm87_vm1 = vcmask 1040384   ;;  %s2006_s13 = smov 32   ;;  %vm101_vm2 = vcmask 261120   ;;  %vm181_vm3 = vcmask 254976   ;;  %vm359_vm4 = vcmask 517376  }
  0x31   :  { %1628 = vmatpush3.bf16.msra.mxu0 %v2049_v0  ;;  %1631 = vmatprep.mubr.msk.bf16.mxu0 %vm2004_vm0, %v2003_v1  ;;  %s2007_s14 = smov 96   ;;  %s1526_s15 = sld [smem:[#allocation2 + $0x2]]  ;;  %vm537_vm5 = vcmask 779776   ;;  %vm704_vm6 = vcmask 1042176  }
  0x32   :  { %1629 = vmatprep.subr.bf16.mxu0 %v2003_v1  ;;  %1636 = vmatpush3.bf16.msra.mxu1 %v2049_v0  ;;  %s1527_s16 = sld [smem:[#allocation2 + $0x3]] }
  0x33   :  { %1637 = vmatprep.subr.bf16.mxu1 %v2003_v1  ;;  %1639 = vmatprep.mubr.msk.bf16.mxu1 %vm2004_vm0, %v2003_v1  ;;  %s1533_s20 = sld [smem:[#allocation2 + $0x4]] }
  0x34   :  { %s1534_s21 = sld [smem:[#allocation2 + $0x5]] }
  0x35   :  { %1630 = vmatpush3.bf16.msra.mxu0 %v2054_v2  ;;  %s76_s11 = scalar_lea.vmem [#allocation6], %s75_s1  ;;  %s1540_s24 = sld [smem:[#allocation2 + $0x6]] }
  0x36   :  { %1638 = vmatpush3.bf16.msra.mxu1 %v2054_v2  ;;  %1643 = vmatprep.subr.bf16.mxu0 %v2003_v1  ;;  %v77_v4 = vld [vmem:[%s76_s11] sm:$0x1]  ;;  %s79_s12 = scalar_lea.vmem [#allocation6], %s1521_s3  ;;  %s1541_s25 = sld [smem:[#allocation2 + $0x7]] }
  0x37   :  { %1651 = vmatprep.subr.bf16.mxu1 %v2003_v1  ;;  %v1522_v5 = vld [vmem:[%s79_s12] ss:$0 sm:$0xff]  ;;  %s184_s17 = scalar_lea.vmem [#allocation6], %s1526_s15  ;;  %s1547_s28 = sld [smem:[#allocation2 + $0x8]] }
  0x38   :  { %1632 = vmatmul.mubr.bf16.vlgmr.msra.gmra.mxu0 %v2005_v3  ;;  %v88_v6 = vsel %vm87_vm1, %v77_v4, %v1522_v5  ;;  %v185_v27 = vld [vmem:[%s184_s17] sm:$0x1]  ;;  %s187_s19 = scalar_lea.vmem [#allocation6], %s1527_s16  ;;  %s1548_s29 = sld [smem:[#allocation2 + $0x9]] }
  0x39   :  { %1644 = vmatpush3.bf16.msra.mxu0 %v2049_v0  ;;  %1647 = vmatprep.mubr.msk.bf16.mxu0 %vm2004_vm0, %v2003_v1  ;;  %v1528_v28 = vld [vmem:[%s187_s19] ss:$0 sm:$0xff]  ;;  %s362_s22 = scalar_lea.vmem [#allocation6], %s1533_s20  ;;  %s1554_s2 = sld [smem:[#allocation2 + $0xa]] }
  0x3a   :  { %1645 = vmatprep.subr.bf16.mxu0 %v2003_v1  ;;  %v195_v29 = vsel %vm87_vm1, %v185_v27, %v1528_v28  ;;  %s365_s23 = scalar_lea.vmem [#allocation6], %s1534_s21  ;;  %s1555_s6 = sld [smem:[#allocation2 + $0xb]] }
  0x3b   :  { %s540_s26 = scalar_lea.vmem [#allocation6], %s1540_s24  ;;  %s1561_s8 = sld [smem:[#allocation2 + $0xc]] }
  0x3c   :  { %s543_s27 = scalar_lea.vmem [#allocation6], %s1541_s25  ;;  %s1562_s9 = sld [smem:[#allocation2 + $0xd]] }
  0x3d   :  { %1646 = vmatpush3.bf16.msra.mxu0 %v2054_v2  ;;  %s707_s30 = scalar_lea.vmem [#allocation6], %s1547_s28  ;;  %s1568_s3 = sld [smem:[#allocation2 + $0xe]] }
  0x3e   :  { %1659 = vmatprep.subr.bf16.mxu0 %v2003_v1  ;;  %s710_s5 = scalar_lea.vmem [#allocation6], %s1548_s29  ;;  %s1569_s11 = sld [smem:[#allocation2 + $0xf]] }
  0x3f   :  { %s884_s0 = scalar_lea.vmem [#allocation6], %s1554_s2 }
  0x40   :  { %s887_s7 = scalar_lea.vmem [#allocation6], %s1555_s6 }
  0x41   :  { %s1061_s10 = scalar_lea.vmem [#allocation6], %s1561_s8 }
  0x42   :  { %s1064_s1 = scalar_lea.vmem [#allocation6], %s1562_s9 }
  0x43   :  { %s1238_s12 = scalar_lea.vmem [#allocation6], %s1568_s3 }
  0x44   :  { %s1241_s15 = scalar_lea.vmem [#allocation6], %s1569_s11 }
  0xf8   :  { %v139_v7 = vpop.f32.mrf.mxu0 }
  0xf9   :  { %v145_v8 = vadd.f32 %v139_v7, %v88_v6 }
  0xfa   :  { %v1633_v9 = vpop.f32.mrf.mxu0 }
  0xfb   :  { %1777 = vtanh.f32 %v145_v8  ;;  %v1525_v10 = vmul.f32 -1.442695, %v145_v8 }
  0xfc   :  { %v142_v11 = vpop.f32.mrf.mxu0 }
  0xfd   :  { %1779 = vpow2.f32 %v1525_v10  ;;  %v363_v11 = vld [vmem:[%s362_s22] sm:$0x1] }
  0xfe   :  { %v1634_v12 = vpop.f32.mrf.mxu0 }
  0xff   :  { %v1535_v12 = vld [vmem:[%s365_s23] ss:$0 sm:$0xff] }
 0x108   :  { %v1778_v13 = vpop.eup %1777 }
 0x109   :  { %154 = vrot.lane.b32.xlu0 %v1778_v13, %s2006_s13  ;;  %v373_v13 = vsel %vm87_vm1, %v363_v11, %v1535_v12 }
 0x10a   :  { %v1780_v14 = vpop.eup %1779 }
 0x10b   :  { %v150_v15 = vadd.f32 1.0, %v1780_v14 }
 0x10d   :  { %1781 = vrcp.f32 %v150_v15 }
 0x11a   :  { %v1782_v16 = vpop.eup %1781 }
 0x11b   :  { %v158_v17 = vmul.f32 0.0, %v1782_v16 }
 0x11d   :  { %160 = vrot.lane.b32.xlu0 %v158_v17, %s2007_s14 }
 0x17b   :  { %v155_v18 = vpop.permute.xlu0 %154 }
 0x17c   :  { %v157_v19 = vmul.f32 %v1782_v16, %v155_v18 }
 0x18f   :  { %v161_v20 = vpop.permute.xlu0 %160 }
 0x190   :  { %v163_v21 = vadd.f32 %v161_v20, %v157_v19 }
 0x192   :  { %1783 = vtanh.f32 %v163_v21  ;;  %257 = vrot.lane.b32.xlu0 %v163_v21, %s2006_s13 }
 0x19f   :  { %v1784_v22 = vpop.eup %1783 }
 0x1a0   :  { %166 = vrot.lane.b32.xlu1 %v1784_v22, %s1994_s18 }
 0x204   :  { %v258_v40 = vpop.permute.xlu0 %257 }
 0x212   :  { %v167_v23 = vpop.permute.xlu1 %166 }
 0x213   :  { %v2078_v24 = vmul.f32 %v167_v23, %v145_v8 }
 0x215   :  { %v196_v25 = vpack.c.bf16 %v2078_v24, %v2078_v24 }
 0x217   :  { %198 = vrot.lane.b32.xlu1 %v196_v25, %s2006_s13 }
 0x289   :  { %v199_v26 = vpop.permute.xlu1 %198 }
 0x28a   :  { %1640 = vmatmul.mubr.msk.bf16.vlgmr.msra.gmra.mxu1 %vm101_vm2, %v199_v26 }
 0x28b   :  { %1652 = vmatpush3.bf16.msra.mxu1 %v2049_v0  ;;  %1655 = vmatprep.mubr.msk.bf16.mxu1 %vm2004_vm0, %v2003_v1 }
 0x28c   :  { %1653 = vmatprep.subr.bf16.mxu1 %v2003_v1 }
 0x28f   :  { %1654 = vmatpush3.bf16.msra.mxu1 %v2054_v2 }
 0x290   :  { %1667 = vmatprep.subr.bf16.mxu1 %v2003_v1 }
 0x34a   :  { %v237_v30 = vpop.f32.mrf.mxu1 }
 0x34b   :  { %v243_v31 = vadd.f32 %v237_v30, %v195_v29 }
 0x34c   :  { %v1641_v32 = vpop.f32.mrf.mxu1 }
 0x34d   :  { %1785 = vtanh.f32 %v243_v31  ;;  %v1530_v33 = vmul.f32 -1.442695, %v243_v31 }
 0x34e   :  { %v240_v34 = vpop.f32.mrf.mxu1 }
 0x34f   :  { %1787 = vpow2.f32 %v1530_v33 }
 0x350   :  { %v1642_v35 = vpop.f32.mrf.mxu1 }
 0x35a   :  { %v1786_v36 = vpop.eup %1785 }
 0x35b   :  { %252 = vrot.lane.b32.xlu1 %v1786_v36, %s2006_s13 }
 0x35c   :  { %v1788_v37 = vpop.eup %1787 }
 0x35d   :  { %v248_v38 = vadd.f32 1.0, %v1788_v37 }
 0x35f   :  { %1789 = vrcp.f32 %v248_v38 }
 0x36c   :  { %v1790_v39 = vpop.eup %1789 }
 0x36d   :  { %v260_v41 = vmul.f32 %v1790_v39, %v258_v40 }
 0x36f   :  { %262 = vrot.lane.b32.xlu0 %v260_v41, %s2007_s14 }
 0x3cd   :  { %v253_v42 = vpop.permute.xlu1 %252 }
 0x3ce   :  { %v255_v43 = vmul.f32 %v1790_v39, %v253_v42 }
 0x3e1   :  { %v263_v44 = vpop.permute.xlu0 %262 }
 0x3e2   :  { %v265_v45 = vadd.f32 %v263_v44, %v255_v43 }
 0x3e4   :  { %1791 = vtanh.f32 %v265_v45 }
 0x3f1   :  { %v1792_v46 = vpop.eup %1791 }
 0x3f2   :  { %268 = vrot.lane.b32.xlu1 %v1792_v46, %s1994_s18 }
 0x3f6   :  { %333 = vrot.lane.b32.xlu1 %v265_v45, %s2006_s13 }
 0x464   :  { %v269_v47 = vpop.permute.xlu1 %268 }
 0x465   :  { %v271_v48 = vmul.f32 %v269_v47, %v243_v31 }
 0x467   :  { %v272_v49 = vpack.c.bf16 %v271_v48, %v271_v48 }
 0x468   :  { %v334_v61 = vpop.permute.xlu1 %333 }
 0x469   :  { %274 = vrot.lane.b32.xlu0 %v272_v49, %s2006_s13 }
 0x4db   :  { %v275_v50 = vpop.permute.xlu0 %274 }
 0x4dc   :  { %1648 = vmatmul.mubr.msk.bf16.vlgmr.msra.gmra.mxu0 %vm101_vm2, %v275_v50 }
 0x4dd   :  { %1660 = vmatpush3.bf16.msra.mxu0 %v2049_v0  ;;  %1663 = vmatprep.mubr.msk.bf16.mxu0 %vm2004_vm0, %v2003_v1 }
 0x4de   :  { %1661 = vmatprep.subr.bf16.mxu0 %v2003_v1 }
 0x4e1   :  { %1662 = vmatpush3.bf16.msra.mxu0 %v2054_v2 }
 0x4e2   :  { %1675 = vmatprep.subr.bf16.mxu0 %v2003_v1 }
 0x59c   :  { %v313_v51 = vpop.f32.mrf.mxu0 }
 0x59d   :  { %v319_v52 = vadd.f32 %v313_v51, %v195_v29 }
 0x59e   :  { %v1649_v53 = vpop.f32.mrf.mxu0 }
 0x59f   :  { %1793 = vtanh.f32 %v319_v52  ;;  %v1532_v54 = vmul.f32 -1.442695, %v319_v52 }
 0x5a0   :  { %v316_v55 = vpop.f32.mrf.mxu0 }
 0x5a1   :  { %1795 = vpow2.f32 %v1532_v54 }
 0x5a2   :  { %v1650_v56 = vpop.f32.mrf.mxu0 }
 0x5ac   :  { %v1794_v57 = vpop.eup %1793 }
 0x5ad   :  { %328 = vrot.lane.b32.xlu0 %v1794_v57, %s2006_s13  ;;  %v541_v57 = vld [vmem:[%s540_s26] sm:$0x1] }
 0x5ae   :  { %v1796_v58 = vpop.eup %1795 }
 0x5af   :  { %v324_v59 = vadd.f32 1.0, %v1796_v58  ;;  %v1542_v58 = vld [vmem:[%s543_s27] ss:$0 sm:$0xff] }
 0x5b1   :  { %1797 = vrcp.f32 %v324_v59  ;;  %v551_v59 = vsel %vm87_vm1, %v541_v57, %v1542_v58 }
 0x5be   :  { %v1798_v60 = vpop.eup %1797 }
 0x5bf   :  { %v336_v62 = vmul.f32 %v1798_v60, %v334_v61 }
 0x5c1   :  { %338 = vrot.lane.b32.xlu1 %v336_v62, %s2007_s14 }
 0x61f   :  { %v329_v63 = vpop.permute.xlu0 %328 }
 0x620   :  { %v331_v3 = vmul.f32 %v1798_v60, %v329_v63 }
 0x633   :  { %v339_v4 = vpop.permute.xlu1 %338 }
 0x634   :  { %v341_v5 = vadd.f32 %v339_v4, %v331_v3 }
 0x636   :  { %1799 = vtanh.f32 %v341_v5 }
 0x643   :  { %v1800_v6 = vpop.eup %1799 }
 0x644   :  { %344 = vrot.lane.b32.xlu0 %v1800_v6, %s1994_s18 }
 0x648   :  { %435 = vrot.lane.b32.xlu0 %v341_v5, %s2006_s13 }
 0x6b6   :  { %v345_v7 = vpop.permute.xlu0 %344 }
 0x6b7   :  { %v2107_v8 = vmul.f32 %v345_v7, %v319_v52 }
 0x6b9   :  { %v374_v9 = vpack.c.bf16 %v2107_v8, %v2107_v8 }
 0x6ba   :  { %v436_v25 = vpop.permute.xlu0 %435 }
 0x6bb   :  { %376 = vrot.lane.b32.xlu1 %v374_v9, %s2006_s13 }
 0x72d   :  { %v377_v10 = vpop.permute.xlu1 %376 }
 0x72e   :  { %1656 = vmatmul.mubr.msk.bf16.vlgmr.msra.gmra.mxu1 %vm101_vm2, %v377_v10 }
 0x72f   :  { %1668 = vmatpush3.bf16.msra.mxu1 %v2049_v0  ;;  %1671 = vmatprep.mubr.msk.bf16.mxu1 %vm2004_vm0, %v2003_v1 }
 0x730   :  { %1669 = vmatprep.subr.bf16.mxu1 %v2003_v1 }
 0x733   :  { %1670 = vmatpush3.bf16.msra.mxu1 %v2054_v2 }
 0x734   :  { %1683 = vmatprep.subr.bf16.mxu1 %v2003_v1 }
 0x7ee   :  { %v415_v14 = vpop.f32.mrf.mxu1 }
 0x7ef   :  { %v421_v15 = vadd.f32 %v415_v14, %v373_v13 }
 0x7f0   :  { %v1657_v16 = vpop.f32.mrf.mxu1 }
 0x7f1   :  { %1801 = vtanh.f32 %v421_v15  ;;  %v1537_v17 = vmul.f32 -1.442695, %v421_v15 }
 0x7f2   :  { %v418_v18 = vpop.f32.mrf.mxu1 }
 0x7f3   :  { %1803 = vpow2.f32 %v1537_v17 }
 0x7f4   :  { %v1658_v19 = vpop.f32.mrf.mxu1 }
 0x7fe   :  { %v1802_v20 = vpop.eup %1801 }
 0x7ff   :  { %430 = vrot.lane.b32.xlu1 %v1802_v20, %s2006_s13 }
 0x800   :  { %v1804_v21 = vpop.eup %1803 }
 0x801   :  { %v426_v22 = vadd.f32 1.0, %v1804_v21 }
 0x803   :  { %1805 = vrcp.f32 %v426_v22 }
 0x810   :  { %v1806_v23 = vpop.eup %1805 }
 0x811   :  { %v438_v26 = vmul.f32 %v1806_v23, %v436_v25 }
 0x813   :  { %440 = vrot.lane.b32.xlu0 %v438_v26, %s2007_s14 }
 0x871   :  { %v431_v27 = vpop.permute.xlu1 %430 }
 0x872   :  { %v433_v28 = vmul.f32 %v1806_v23, %v431_v27 }
 0x885   :  { %v441_v29 = vpop.permute.xlu0 %440 }
 0x886   :  { %v443_v30 = vadd.f32 %v441_v29, %v433_v28 }
 0x888   :  { %1807 = vtanh.f32 %v443_v30 }
 0x895   :  { %v1808_v31 = vpop.eup %1807 }
 0x896   :  { %446 = vrot.lane.b32.xlu1 %v1808_v31, %s1994_s18 }
 0x89a   :  { %511 = vrot.lane.b32.xlu1 %v443_v30, %s2006_s13 }
 0x908   :  { %v447_v32 = vpop.permute.xlu1 %446 }
 0x909   :  { %v449_v33 = vmul.f32 %v447_v32, %v421_v15 }
 0x90b   :  { %v450_v34 = vpack.c.bf16 %v449_v33, %v449_v33 }
 0x90c   :  { %v512_v46 = vpop.permute.xlu1 %511 }
 0x90d   :  { %452 = vrot.lane.b32.xlu0 %v450_v34, %s2006_s13 }
 0x97f   :  { %v453_v35 = vpop.permute.xlu0 %452 }
 0x980   :  { %1664 = vmatmul.mubr.msk.bf16.vlgmr.msra.gmra.mxu0 %vm101_vm2, %v453_v35 }
 0x981   :  { %1676 = vmatpush3.bf16.msra.mxu0 %v2049_v0  ;;  %1679 = vmatprep.mubr.msk.bf16.mxu0 %vm2004_vm0, %v2003_v1 }
 0x982   :  { %1677 = vmatprep.subr.bf16.mxu0 %v2003_v1 }
 0x985   :  { %1678 = vmatpush3.bf16.msra.mxu0 %v2054_v2 }
 0x986   :  { %1691 = vmatprep.subr.bf16.mxu0 %v2003_v1 }
 0xa40   :  { %v491_v36 = vpop.f32.mrf.mxu0 }
 0xa41   :  { %v497_v37 = vadd.f32 %v491_v36, %v373_v13 }
 0xa42   :  { %v1665_v38 = vpop.f32.mrf.mxu0 }
 0xa43   :  { %1809 = vtanh.f32 %v497_v37  ;;  %v1539_v39 = vmul.f32 -1.442695, %v497_v37 }
 0xa44   :  { %v494_v40 = vpop.f32.mrf.mxu0 }
 0xa45   :  { %1811 = vpow2.f32 %v1539_v39 }
 0xa46   :  { %v1666_v41 = vpop.f32.mrf.mxu0 }
 0xa50   :  { %v1810_v42 = vpop.eup %1809 }
 0xa51   :  { %506 = vrot.lane.b32.xlu0 %v1810_v42, %s2006_s13 }
 0xa52   :  { %v1812_v43 = vpop.eup %1811 }
 0xa53   :  { %v502_v44 = vadd.f32 1.0, %v1812_v43  ;;  %v708_v43 = vld [vmem:[%s707_s30] sm:$0x1] }
 0xa55   :  { %1813 = vrcp.f32 %v502_v44  ;;  %v1549_v44 = vld [vmem:[%s710_s5] ss:$0 sm:$0xff] }
 0xa62   :  { %v1814_v45 = vpop.eup %1813 }
 0xa63   :  { %v514_v47 = vmul.f32 %v1814_v45, %v512_v46 }
 0xa65   :  { %516 = vrot.lane.b32.xlu1 %v514_v47, %s2007_s14 }
 0xac3   :  { %v507_v48 = vpop.permute.xlu0 %506 }
 0xac4   :  { %v509_v49 = vmul.f32 %v1814_v45, %v507_v48  ;;  %v718_v45 = vsel %vm87_vm1, %v708_v43, %v1549_v44 }
 0xad7   :  { %v517_v50 = vpop.permute.xlu1 %516 }
 0xad8   :  { %v519_v51 = vadd.f32 %v517_v50, %v509_v49 }
 0xada   :  { %1815 = vtanh.f32 %v519_v51 }
 0xae7   :  { %v1816_v52 = vpop.eup %1815 }
 0xae8   :  { %522 = vrot.lane.b32.xlu0 %v1816_v52, %s1994_s18 }
 0xaec   :  { %613 = vrot.lane.b32.xlu0 %v519_v51, %s2006_s13 }
 0xb5a   :  { %v523_v53 = vpop.permute.xlu0 %522 }
 0xb5b   :  { %v2136_v54 = vmul.f32 %v523_v53, %v497_v37 }
 0xb5d   :  { %v552_v55 = vpack.c.bf16 %v2136_v54, %v2136_v54 }
 0xb5e   :  { %v614_v10 = vpop.permute.xlu0 %613 }
 0xb5f   :  { %554 = vrot.lane.b32.xlu1 %v552_v55, %s2006_s13 }
 0xbd1   :  { %v555_v56 = vpop.permute.xlu1 %554 }
 0xbd2   :  { %1672 = vmatmul.mubr.msk.bf16.vlgmr.msra.gmra.mxu1 %vm101_vm2, %v555_v56 }
 0xbd3   :  { %1684 = vmatpush3.bf16.msra.mxu1 %v2049_v0  ;;  %1687 = vmatprep.mubr.msk.bf16.mxu1 %vm2004_vm0, %v2003_v1 }
 0xbd4   :  { %1685 = vmatprep.subr.bf16.mxu1 %v2003_v1 }
 0xbd7   :  { %1686 = vmatpush3.bf16.msra.mxu1 %v2054_v2 }
 0xbd8   :  { %1699 = vmatprep.subr.bf16.mxu1 %v2003_v1 }
 0xc92   :  { %v593_v60 = vpop.f32.mrf.mxu1 }
 0xc93   :  { %v599_v61 = vadd.f32 %v593_v60, %v551_v59 }
 0xc94   :  { %v1673_v62 = vpop.f32.mrf.mxu1 }
 0xc95   :  { %1817 = vtanh.f32 %v599_v61  ;;  %v1544_v63 = vmul.f32 -1.442695, %v599_v61 }
 0xc96   :  { %v596_v3 = vpop.f32.mrf.mxu1 }
 0xc97   :  { %1819 = vpow2.f32 %v1544_v63 }
 0xc98   :  { %v1674_v4 = vpop.f32.mrf.mxu1 }
 0xca2   :  { %v1818_v5 = vpop.eup %1817 }
 0xca3   :  { %608 = vrot.lane.b32.xlu1 %v1818_v5, %s2006_s13 }
 0xca4   :  { %v1820_v6 = vpop.eup %1819 }
 0xca5   :  { %v604_v7 = vadd.f32 1.0, %v1820_v6 }
 0xca7   :  { %1821 = vrcp.f32 %v604_v7 }
 0xcb4   :  { %v1822_v9 = vpop.eup %1821 }
 0xcb5   :  { %v616_v11 = vmul.f32 %v1822_v9, %v614_v10 }
 0xcb7   :  { %618 = vrot.lane.b32.xlu0 %v616_v11, %s2007_s14 }
 0xd15   :  { %v609_v12 = vpop.permute.xlu1 %608 }
 0xd16   :  { %v611_v13 = vmul.f32 %v1822_v9, %v609_v12 }
 0xd29   :  { %v619_v14 = vpop.permute.xlu0 %618 }
 0xd2a   :  { %v621_v15 = vadd.f32 %v619_v14, %v611_v13 }
 0xd2c   :  { %1823 = vtanh.f32 %v621_v15 }
 0xd39   :  { %v1824_v16 = vpop.eup %1823 }
 0xd3a   :  { %624 = vrot.lane.b32.xlu1 %v1824_v16, %s1994_s18 }
 0xd3e   :  { %689 = vrot.lane.b32.xlu1 %v621_v15, %s2006_s13 }
 0xdac   :  { %v625_v17 = vpop.permute.xlu1 %624 }
 0xdad   :  { %v627_v18 = vmul.f32 %v625_v17, %v599_v61 }
 0xdaf   :  { %v628_v19 = vpack.c.bf16 %v627_v18, %v627_v18 }
 0xdb0   :  { %v690_v32 = vpop.permute.xlu1 %689 }
 0xdb1   :  { %630 = vrot.lane.b32.xlu0 %v628_v19, %s2006_s13 }
 0xe23   :  { %v631_v20 = vpop.permute.xlu0 %630 }
 0xe24   :  { %1680 = vmatmul.mubr.msk.bf16.vlgmr.msra.gmra.mxu0 %vm101_vm2, %v631_v20 }
 0xe25   :  { %1692 = vmatpush3.bf16.msra.mxu0 %v2049_v0  ;;  %1695 = vmatprep.mubr.msk.bf16.mxu0 %vm2004_vm0, %v2003_v1 }
 0xe26   :  { %1693 = vmatprep.subr.bf16.mxu0 %v2003_v1 }
 0xe29   :  { %1694 = vmatpush3.bf16.msra.mxu0 %v2054_v2 }
 0xe2a   :  { %1707 = vmatprep.subr.bf16.mxu0 %v2003_v1 }
 0xee4   :  { %v669_v21 = vpop.f32.mrf.mxu0 }
 0xee5   :  { %v675_v22 = vadd.f32 %v669_v21, %v551_v59 }
 0xee6   :  { %v1681_v23 = vpop.f32.mrf.mxu0 }
 0xee7   :  { %1825 = vtanh.f32 %v675_v22  ;;  %v1546_v25 = vmul.f32 -1.442695, %v675_v22 }
 0xee8   :  { %v672_v26 = vpop.f32.mrf.mxu0 }
 0xee9   :  { %1827 = vpow2.f32 %v1546_v25 }
 0xeea   :  { %v1682_v27 = vpop.f32.mrf.mxu0 }
 0xef4   :  { %v1826_v28 = vpop.eup %1825 }
 0xef5   :  { %684 = vrot.lane.b32.xlu0 %v1826_v28, %s2006_s13 }
 0xef6   :  { %v1828_v29 = vpop.eup %1827 }
 0xef7   :  { %v680_v30 = vadd.f32 1.0, %v1828_v29 }
 0xef9   :  { %1829 = vrcp.f32 %v680_v30  ;;  %v885_v30 = vld [vmem:[%s884_s0] sm:$0x1] }
 0xf06   :  { %v1830_v31 = vpop.eup %1829 }
 0xf07   :  { %v692_v33 = vmul.f32 %v1830_v31, %v690_v32 }
 0xf09   :  { %694 = vrot.lane.b32.xlu1 %v692_v33, %s2007_s14 }
 0xf67   :  { %v685_v34 = vpop.permute.xlu0 %684 }
 0xf68   :  { %v687_v35 = vmul.f32 %v1830_v31, %v685_v34  ;;  %v1556_v31 = vld [vmem:[%s887_s7] ss:$0 sm:$0xff] }
 0xf69   :  { %v895_v32 = vsel %vm87_vm1, %v885_v30, %v1556_v31 }
 0xf7b   :  { %v695_v36 = vpop.permute.xlu1 %694 }
 0xf7c   :  { %v697_v37 = vadd.f32 %v695_v36, %v687_v35 }
 0xf7e   :  { %1831 = vtanh.f32 %v697_v37 }
 0xf8b   :  { %v1832_v38 = vpop.eup %1831 }
 0xf8c   :  { %700 = vrot.lane.b32.xlu0 %v1832_v38, %s1994_s18 }
 0xf90   :  { %780 = vrot.lane.b32.xlu0 %v697_v37, %s2006_s13 }
 0xffe   :  { %v701_v39 = vpop.permute.xlu0 %700 }
 0xfff   :  { %v2165_v40 = vmul.f32 %v701_v39, %v675_v22 }
0x1001   :  { %v719_v41 = vpack.c.bf16 %v2165_v40, %v2165_v40 }
0x1002   :  { %v781_v57 = vpop.permute.xlu0 %780 }
0x1003   :  { %721 = vrot.lane.b32.xlu1 %v719_v41, %s2006_s13 }
0x1075   :  { %v722_v42 = vpop.permute.xlu1 %721 }
0x1076   :  { %1688 = vmatmul.mubr.msk.bf16.vlgmr.msra.gmra.mxu1 %vm101_vm2, %v722_v42 }
0x1077   :  { %1700 = vmatpush3.bf16.msra.mxu1 %v2049_v0  ;;  %1703 = vmatprep.mubr.msk.bf16.mxu1 %vm2004_vm0, %v2003_v1 }
0x1078   :  { %1701 = vmatprep.subr.bf16.mxu1 %v2003_v1 }
0x107b   :  { %1702 = vmatpush3.bf16.msra.mxu1 %v2054_v2 }
0x107c   :  { %1715 = vmatprep.subr.bf16.mxu1 %v2003_v1 }
0x1136   :  { %v760_v46 = vpop.f32.mrf.mxu1 }
0x1137   :  { %v766_v47 = vadd.f32 %v760_v46, %v718_v45 }
0x1138   :  { %v1689_v48 = vpop.f32.mrf.mxu1 }
0x1139   :  { %1833 = vtanh.f32 %v766_v47  ;;  %v1551_v49 = vmul.f32 -1.442695, %v766_v47 }
0x113a   :  { %v763_v50 = vpop.f32.mrf.mxu1 }
0x113b   :  { %1835 = vpow2.f32 %v1551_v49 }
0x113c   :  { %v1690_v51 = vpop.f32.mrf.mxu1 }
0x1146   :  { %v1834_v52 = vpop.eup %1833 }
0x1147   :  { %775 = vrot.lane.b32.xlu1 %v1834_v52, %s2006_s13 }
0x1148   :  { %v1836_v53 = vpop.eup %1835 }
0x1149   :  { %v771_v55 = vadd.f32 1.0, %v1836_v53 }
0x114b   :  { %1837 = vrcp.f32 %v771_v55 }
0x1158   :  { %v1838_v56 = vpop.eup %1837 }
0x1159   :  { %v783_v58 = vmul.f32 %v1838_v56, %v781_v57 }
0x115b   :  { %785 = vrot.lane.b32.xlu0 %v783_v58, %s2007_s14 }
0x11b9   :  { %v776_v59 = vpop.permute.xlu1 %775 }
0x11ba   :  { %v778_v60 = vmul.f32 %v1838_v56, %v776_v59 }
0x11cd   :  { %v786_v61 = vpop.permute.xlu0 %785 }
0x11ce   :  { %v788_v62 = vadd.f32 %v786_v61, %v778_v60 }
0x11d0   :  { %1839 = vtanh.f32 %v788_v62 }
0x11dd   :  { %v1840_v63 = vpop.eup %1839 }
0x11de   :  { %791 = vrot.lane.b32.xlu1 %v1840_v63, %s1994_s18 }
0x11e2   :  { %856 = vrot.lane.b32.xlu1 %v788_v62, %s2006_s13 }
0x1250   :  { %v792_v3 = vpop.permute.xlu1 %791 }
0x1251   :  { %v794_v4 = vmul.f32 %v792_v3, %v766_v47 }
0x1253   :  { %v795_v5 = vpack.c.bf16 %v794_v4, %v794_v4 }
0x1254   :  { %v857_v18 = vpop.permute.xlu1 %856 }
0x1255   :  { %797 = vrot.lane.b32.xlu0 %v795_v5, %s2006_s13 }
0x12c7   :  { %v798_v6 = vpop.permute.xlu0 %797 }
0x12c8   :  { %1696 = vmatmul.mubr.msk.bf16.vlgmr.msra.gmra.mxu0 %vm101_vm2, %v798_v6 }
0x12c9   :  { %1708 = vmatpush3.bf16.msra.mxu0 %v2049_v0  ;;  %1711 = vmatprep.mubr.msk.bf16.mxu0 %vm2004_vm0, %v2003_v1 }
0x12ca   :  { %1709 = vmatprep.subr.bf16.mxu0 %v2003_v1 }
0x12cd   :  { %1710 = vmatpush3.bf16.msra.mxu0 %v2054_v2 }
0x12ce   :  { %1723 = vmatprep.subr.bf16.mxu0 %v2003_v1 }
0x1388   :  { %v836_v7 = vpop.f32.mrf.mxu0 }
0x1389   :  { %v842_v9 = vadd.f32 %v836_v7, %v718_v45 }
0x138a   :  { %v1697_v10 = vpop.f32.mrf.mxu0 }
0x138b   :  { %1841 = vtanh.f32 %v842_v9  ;;  %v1553_v11 = vmul.f32 -1.442695, %v842_v9 }
0x138c   :  { %v839_v12 = vpop.f32.mrf.mxu0 }
0x138d   :  { %1843 = vpow2.f32 %v1553_v11 }
0x138e   :  { %v1698_v13 = vpop.f32.mrf.mxu0 }
0x1398   :  { %v1842_v14 = vpop.eup %1841 }
0x1399   :  { %851 = vrot.lane.b32.xlu0 %v1842_v14, %s2006_s13 }
0x139a   :  { %v1844_v15 = vpop.eup %1843 }
0x139b   :  { %v847_v16 = vadd.f32 1.0, %v1844_v15 }
0x139d   :  { %1845 = vrcp.f32 %v847_v16 }
0x13aa   :  { %v1846_v17 = vpop.eup %1845 }
0x13ab   :  { %v859_v19 = vmul.f32 %v1846_v17, %v857_v18  ;;  %v1563_v18 = vld [vmem:[%s1064_s1] ss:$0 sm:$0xff] }
0x13ad   :  { %861 = vrot.lane.b32.xlu1 %v859_v19, %s2007_s14 }
0x140b   :  { %v852_v20 = vpop.permute.xlu0 %851 }
0x140c   :  { %v854_v21 = vmul.f32 %v1846_v17, %v852_v20  ;;  %v1062_v17 = vld [vmem:[%s1061_s10] sm:$0x1] }
0x140d   :  { %v1072_v19 = vsel %vm87_vm1, %v1062_v17, %v1563_v18 }
0x141f   :  { %v862_v22 = vpop.permute.xlu1 %861 }
0x1420   :  { %v864_v23 = vadd.f32 %v862_v22, %v854_v21 }
0x1422   :  { %1847 = vtanh.f32 %v864_v23 }
0x142f   :  { %v1848_v25 = vpop.eup %1847 }
0x1430   :  { %867 = vrot.lane.b32.xlu0 %v1848_v25, %s1994_s18 }
0x1434   :  { %957 = vrot.lane.b32.xlu0 %v864_v23, %s2006_s13 }
0x14a2   :  { %v868_v26 = vpop.permute.xlu0 %867 }
0x14a3   :  { %v2194_v27 = vmul.f32 %v868_v26, %v842_v9 }
0x14a5   :  { %v896_v28 = vpack.c.bf16 %v2194_v27, %v2194_v27 }
0x14a6   :  { %v958_v44 = vpop.permute.xlu0 %957 }
0x14a7   :  { %898 = vrot.lane.b32.xlu1 %v896_v28, %s2006_s13 }
0x1519   :  { %v899_v29 = vpop.permute.xlu1 %898 }
0x151a   :  { %1704 = vmatmul.mubr.msk.bf16.vlgmr.msra.gmra.mxu1 %vm101_vm2, %v899_v29 }
0x151b   :  { %1716 = vmatpush3.bf16.msra.mxu1 %v2049_v0  ;;  %1719 = vmatprep.mubr.msk.bf16.mxu1 %vm2004_vm0, %v2003_v1 }
0x151c   :  { %1717 = vmatprep.subr.bf16.mxu1 %v2003_v1 }
0x151f   :  { %1718 = vmatpush3.bf16.msra.mxu1 %v2054_v2 }
0x1520   :  { %1731 = vmatprep.subr.bf16.mxu1 %v2003_v1 }
0x15da   :  { %v937_v33 = vpop.f32.mrf.mxu1 }
0x15db   :  { %v943_v34 = vadd.f32 %v937_v33, %v895_v32 }
0x15dc   :  { %v1705_v35 = vpop.f32.mrf.mxu1 }
0x15dd   :  { %1849 = vtanh.f32 %v943_v34  ;;  %v1558_v36 = vmul.f32 -1.442695, %v943_v34 }
0x15de   :  { %v940_v37 = vpop.f32.mrf.mxu1 }
0x15df   :  { %1851 = vpow2.f32 %v1558_v36 }
0x15e0   :  { %v1706_v38 = vpop.f32.mrf.mxu1 }
0x15ea   :  { %v1850_v39 = vpop.eup %1849 }
0x15eb   :  { %952 = vrot.lane.b32.xlu1 %v1850_v39, %s2006_s13 }
0x15ec   :  { %v1852_v41 = vpop.eup %1851 }
0x15ed   :  { %v948_v42 = vadd.f32 1.0, %v1852_v41 }
0x15ef   :  { %1853 = vrcp.f32 %v948_v42 }
0x15fc   :  { %v1854_v43 = vpop.eup %1853 }
0x15fd   :  { %v960_v45 = vmul.f32 %v1854_v43, %v958_v44 }
0x15ff   :  { %962 = vrot.lane.b32.xlu0 %v960_v45, %s2007_s14 }
0x165d   :  { %v953_v46 = vpop.permute.xlu1 %952 }
0x165e   :  { %v955_v47 = vmul.f32 %v1854_v43, %v953_v46 }
0x1671   :  { %v963_v48 = vpop.permute.xlu0 %962 }
0x1672   :  { %v965_v49 = vadd.f32 %v963_v48, %v955_v47 }
0x1674   :  { %1855 = vtanh.f32 %v965_v49 }
0x1681   :  { %v1856_v50 = vpop.eup %1855 }
0x1682   :  { %968 = vrot.lane.b32.xlu1 %v1856_v50, %s1994_s18 }
0x1686   :  { %1033 = vrot.lane.b32.xlu1 %v965_v49, %s2006_s13 }
0x16f4   :  { %v969_v51 = vpop.permute.xlu1 %968 }
0x16f5   :  { %v971_v52 = vmul.f32 %v969_v51, %v943_v34 }
0x16f7   :  { %v972_v53 = vpack.c.bf16 %v971_v52, %v971_v52 }
0x16f8   :  { %v1034_v5 = vpop.permute.xlu1 %1033 }
0x16f9   :  { %974 = vrot.lane.b32.xlu0 %v972_v53, %s2006_s13 }
0x176b   :  { %v975_v55 = vpop.permute.xlu0 %974 }
0x176c   :  { %1712 = vmatmul.mubr.msk.bf16.vlgmr.msra.gmra.mxu0 %vm101_vm2, %v975_v55 }
0x176d   :  { %1724 = vmatpush3.bf16.msra.mxu0 %v2049_v0  ;;  %1727 = vmatprep.mubr.msk.bf16.mxu0 %vm2004_vm0, %v2003_v1 }
0x176e   :  { %1725 = vmatprep.subr.bf16.mxu0 %v2003_v1 }
0x1771   :  { %1726 = vmatpush3.bf16.msra.mxu0 %v2054_v2 }
0x1772   :  { %1739 = vmatprep.subr.bf16.mxu0 %v2003_v1 }
0x182c   :  { %v1013_v56 = vpop.f32.mrf.mxu0 }
0x182d   :  { %v1019_v57 = vadd.f32 %v1013_v56, %v895_v32 }
0x182e   :  { %v1713_v58 = vpop.f32.mrf.mxu0 }
0x182f   :  { %1857 = vtanh.f32 %v1019_v57  ;;  %v1560_v59 = vmul.f32 -1.442695, %v1019_v57 }
0x1830   :  { %v1016_v60 = vpop.f32.mrf.mxu0 }
0x1831   :  { %1859 = vpow2.f32 %v1560_v59 }
0x1832   :  { %v1714_v61 = vpop.f32.mrf.mxu0 }
0x183c   :  { %v1858_v62 = vpop.eup %1857 }
0x183d   :  { %1028 = vrot.lane.b32.xlu0 %v1858_v62, %s2006_s13 }
0x183e   :  { %v1860_v63 = vpop.eup %1859 }
0x183f   :  { %v1024_v3 = vadd.f32 1.0, %v1860_v63 }
0x1841   :  { %1861 = vrcp.f32 %v1024_v3  ;;  %v1239_v3 = vld [vmem:[%s1238_s12] sm:$0x1] }
0x184e   :  { %v1862_v4 = vpop.eup %1861 }
0x184f   :  { %v1036_v6 = vmul.f32 %v1862_v4, %v1034_v5 }
0x1851   :  { %1038 = vrot.lane.b32.xlu1 %v1036_v6, %s2007_s14 }
0x18af   :  { %v1029_v7 = vpop.permute.xlu0 %1028 }
0x18b0   :  { %v1031_v9 = vmul.f32 %v1862_v4, %v1029_v7  ;;  %v1570_v4 = vld [vmem:[%s1241_s15] ss:$0 sm:$0xff] }
0x18b1   :  { %v1249_v5 = vsel %vm87_vm1, %v1239_v3, %v1570_v4 }
0x18c3   :  { %v1039_v10 = vpop.permute.xlu1 %1038 }
0x18c4   :  { %v1041_v11 = vadd.f32 %v1039_v10, %v1031_v9 }
0x18c6   :  { %1863 = vtanh.f32 %v1041_v11 }
0x18d3   :  { %v1864_v12 = vpop.eup %1863 }
0x18d4   :  { %1044 = vrot.lane.b32.xlu0 %v1864_v12, %s1994_s18 }
0x18d8   :  { %1134 = vrot.lane.b32.xlu0 %v1041_v11, %s2006_s13 }
0x1946   :  { %v1045_v13 = vpop.permute.xlu0 %1044 }
0x1947   :  { %v2223_v14 = vmul.f32 %v1045_v13, %v1019_v57 }
0x1949   :  { %v1073_v15 = vpack.c.bf16 %v2223_v14, %v2223_v14 }
0x194a   :  { %v1135_v32 = vpop.permute.xlu0 %1134 }
0x194b   :  { %1075 = vrot.lane.b32.xlu1 %v1073_v15, %s2006_s13 }
0x19bd   :  { %v1076_v16 = vpop.permute.xlu1 %1075 }
0x19be   :  { %1720 = vmatmul.mubr.msk.bf16.vlgmr.msra.gmra.mxu1 %vm101_vm2, %v1076_v16 }
0x19bf   :  { %1732 = vmatpush3.bf16.msra.mxu1 %v2049_v0  ;;  %1735 = vmatprep.mubr.msk.bf16.mxu1 %vm2004_vm0, %v2003_v1 }
0x19c0   :  { %1733 = vmatprep.subr.bf16.mxu1 %v2003_v1 }
0x19c3   :  { %1734 = vmatpush3.bf16.msra.mxu1 %v2054_v2 }
0x19c4   :  { %1747 = vmatprep.subr.mxu1 %v2003_v1 }
0x1a7e   :  { %v1114_v20 = vpop.f32.mrf.mxu1 }
0x1a7f   :  { %v1120_v21 = vadd.f32 %v1114_v20, %v1072_v19 }
0x1a80   :  { %v1721_v22 = vpop.f32.mrf.mxu1 }
0x1a81   :  { %1865 = vtanh.f32 %v1120_v21  ;;  %v1565_v23 = vmul.f32 -1.442695, %v1120_v21 }
0x1a82   :  { %v1117_v25 = vpop.f32.mrf.mxu1 }
0x1a83   :  { %1867 = vpow2.f32 %v1565_v23 }
0x1a84   :  { %v1722_v26 = vpop.f32.mrf.mxu1 }
0x1a8e   :  { %v1866_v28 = vpop.eup %1865 }
0x1a8f   :  { %1129 = vrot.lane.b32.xlu1 %v1866_v28, %s2006_s13 }
0x1a90   :  { %v1868_v29 = vpop.eup %1867 }
0x1a91   :  { %v1125_v30 = vadd.f32 1.0, %v1868_v29 }
0x1a93   :  { %1869 = vrcp.f32 %v1125_v30 }
0x1aa0   :  { %v1870_v31 = vpop.eup %1869 }
0x1aa1   :  { %v1137_v33 = vmul.f32 %v1870_v31, %v1135_v32 }
0x1aa3   :  { %1139 = vrot.lane.b32.xlu0 %v1137_v33, %s2007_s14 }
0x1b01   :  { %v1130_v34 = vpop.permute.xlu1 %1129 }
0x1b02   :  { %v1132_v35 = vmul.f32 %v1870_v31, %v1130_v34 }
0x1b15   :  { %v1140_v36 = vpop.permute.xlu0 %1139 }
0x1b16   :  { %v1142_v37 = vadd.f32 %v1140_v36, %v1132_v35 }
0x1b18   :  { %1871 = vtanh.f32 %v1142_v37 }
0x1b25   :  { %v1872_v38 = vpop.eup %1871 }
0x1b26   :  { %1145 = vrot.lane.b32.xlu1 %v1872_v38, %s1994_s18 }
0x1b2a   :  { %1210 = vrot.lane.b32.xlu1 %v1142_v37, %s2006_s13 }
0x1b98   :  { %v1146_v39 = vpop.permute.xlu1 %1145 }
0x1b99   :  { %v1148_v41 = vmul.f32 %v1146_v39, %v1120_v21 }
0x1b9b   :  { %v1149_v42 = vpack.c.bf16 %v1148_v41, %v1148_v41 }
0x1b9c   :  { %v1211_v53 = vpop.permute.xlu1 %1210 }
0x1b9d   :  { %1151 = vrot.lane.b32.xlu0 %v1149_v42, %s2006_s13 }
0x1c0f   :  { %v1152_v43 = vpop.permute.xlu0 %1151 }
0x1c10   :  { %1728 = vmatmul.mubr.msk.bf16.vlgmr.msra.gmra.mxu0 %vm101_vm2, %v1152_v43 }
0x1c11   :  { %1740 = vmatpush3.bf16.msra.mxu0 %v2049_v0  ;;  %1743 = vmatprep.mubr.msk.bf16.mxu0 %vm2004_vm0, %v2003_v1 }
0x1c12   :  { %1741 = vmatprep.subr.bf16.mxu0 %v2003_v1 }
0x1c15   :  { %1742 = vmatpush3.bf16.msra.mxu0 %v2054_v2 }
0x1cd0   :  { %v1190_v44 = vpop.f32.mrf.mxu0 }
0x1cd1   :  { %v1196_v45 = vadd.f32 %v1190_v44, %v1072_v19 }
0x1cd2   :  { %v1729_v46 = vpop.f32.mrf.mxu0 }
0x1cd3   :  { %1873 = vtanh.f32 %v1196_v45  ;;  %v1567_v47 = vmul.f32 -1.442695, %v1196_v45 }
0x1cd4   :  { %v1193_v48 = vpop.f32.mrf.mxu0 }
0x1cd5   :  { %1875 = vpow2.f32 %v1567_v47  ;;  %v2008_v48 = vmov 1983009808  }
0x1cd6   :  { %v1730_v49 = vpop.f32.mrf.mxu0 }
0x1cd7   :  { %v172_v49 = vunpack.c.l.s4 %v2008_v48 }
0x1ce0   :  { %v1874_v50 = vpop.eup %1873 }
0x1ce1   :  { %1205 = vrot.lane.b32.xlu0 %v1874_v50, %s2006_s13  ;;  %v174_v50 = vlaneseq }
0x1ce2   :  { %v1876_v51 = vpop.eup %1875 }
0x1ce3   :  { %v1201_v0 = vadd.f32 1.0, %v1876_v51  ;;  %v173_v51 = vunpack.c.0.s8 %v172_v49 }
0x1ce5   :  { %1877 = vrcp.f32 %v1201_v0  ;;  %v175_v0 = vshrl.u32 %v174_v50, 7 }
0x1cf2   :  { %v1878_v52 = vpop.eup %1877 }
0x1cf3   :  { %v1213_v55 = vmul.f32 %v1878_v52, %v1211_v53 }
0x1cf5   :  { %1215 = vrot.lane.b32.xlu1 %v1213_v55, %s2007_s14  ;;  %v1406_v55 = vld [vmem:[#allocation9 + $0x18] sm:$0xff] }
0x1d53   :  { %v1206_v2 = vpop.permute.xlu0 %1205 }
0x1d54   :  { %v1208_v56 = vmul.f32 %v1878_v52, %v1206_v2  ;;  %v176_v52 = vsub.s32 %v173_v51, %v175_v0  ;;  %v1405_v2 = vld [vmem:[#allocation9 + $0x10] sm:$0xff] }
0x1d56   :  { %v878_v3 = vrot.slane %v2194_v27, %v176_v52 }
0x1d67   :  { %v1216_v57 = vpop.permute.xlu1 %1215 }
0x1d68   :  { %v1218_v58 = vadd.f32 %v1216_v57, %v1208_v56  ;;  %v177_v56 = vrot.slane %v2078_v24, %v176_v52  ;;  %v1404_v57 = vld [vmem:[#allocation9 + $0x8] sm:$0xff]  ;;  %v533_v24 = vrot.slane %v2136_v54, %v176_v52 }
0x1d6a   :  { %1879 = vtanh.f32 %v1218_v58 }
0x1d77   :  { %v1880_v59 = vpop.eup %1879 }
0x1d78   :  { %1221 = vrot.lane.b32.xlu0 %v1880_v59, %s1994_s18  ;;  %v355_v59 = vrot.slane %v2107_v8, %v176_v52  ;;  %v1055_v8 = vrot.slane %v2223_v14, %v176_v52 }
0x1d7c   :  { %1311 = vrot.lane.b32.xlu0 %v1218_v58, %s2006_s13  ;;  %v1403_v58 = vld [vmem:[#allocation9] sm:$0xff] }
0x1dea   :  { %v1222_v60 = vpop.permute.xlu0 %1221 }
0x1deb   :  { %v2251_v61 = vmul.f32 %v1222_v60, %v1196_v45 }
0x1ded   :  { %v1250_v62 = vpack.c.bf16 %v2251_v61, %v2251_v61  ;;  %v1232_v4 = vrot.slane %v2251_v61, %v176_v52 }
0x1dee   :  { %v1312_v18 = vpop.permute.xlu0 %1311 }
0x1def   :  { %1252 = vrot.lane.b32.xlu1 %v1250_v62, %s2006_s13 }
0x1e61   :  { %v1253_v63 = vpop.permute.xlu1 %1252 }
0x1e62   :  { %1736 = vmatmul.mubr.msk.bf16.vlgmr.msra.gmra.mxu1 %vm101_vm2, %v1253_v63 }
0x1e63   :  { %1755 = vmatprep.mubr.msk.f32.mxu1 %vm2004_vm0, %v2003_v1  ;;  %1748 = vmatpush3.msra.mxu1 %v1406_v55 }
0x1e64   :  { %1749 = vmatprep.subr.mxu1 %v2003_v1 }
0x1e65   :  { %1750 = vmatpush3.msra.mxu1 %v1405_v2 }
0x1e66   :  { %1751 = vmatprep.subr.mxu1 %v2003_v1 }
0x1e67   :  { %1752 = vmatpush3.msra.mxu1 %v1404_v57 }
0x1e68   :  { %1753 = vmatprep.subr.mxu1 %v2003_v1 }
0x1e69   :  { %1754 = vmatpush3.msra.mxu1 %v1403_v58 }
0x1f22   :  { %v1291_v6 = vpop.f32.mrf.mxu1 }
0x1f23   :  { %v1297_v7 = vadd.f32 %v1291_v6, %v1249_v5 }
0x1f24   :  { %v1737_v9 = vpop.f32.mrf.mxu1 }
0x1f25   :  { %1881 = vtanh.f32 %v1297_v7  ;;  %v1572_v10 = vmul.f32 -1.442695, %v1297_v7 }
0x1f26   :  { %v1294_v11 = vpop.f32.mrf.mxu1 }
0x1f27   :  { %1883 = vpow2.f32 %v1572_v10 }
0x1f28   :  { %v1738_v12 = vpop.f32.mrf.mxu1 }
0x1f32   :  { %v1882_v13 = vpop.eup %1881 }
0x1f33   :  { %1306 = vrot.lane.b32.xlu1 %v1882_v13, %s2006_s13 }
0x1f34   :  { %v1884_v15 = vpop.eup %1883 }
0x1f35   :  { %v1302_v16 = vadd.f32 1.0, %v1884_v15 }
0x1f37   :  { %1885 = vrcp.f32 %v1302_v16 }
0x1f44   :  { %v1886_v17 = vpop.eup %1885 }
0x1f45   :  { %v1314_v19 = vmul.f32 %v1886_v17, %v1312_v18 }
0x1f47   :  { %1316 = vrot.lane.b32.xlu0 %v1314_v19, %s2007_s14 }
0x1fa5   :  { %v1307_v20 = vpop.permute.xlu1 %1306 }
0x1fa6   :  { %v1309_v21 = vmul.f32 %v1886_v17, %v1307_v20 }
0x1fb9   :  { %v1317_v22 = vpop.permute.xlu0 %1316 }
0x1fba   :  { %v1319_v23 = vadd.f32 %v1317_v22, %v1309_v21 }
0x1fbc   :  { %1887 = vtanh.f32 %v1319_v23 }
0x1fc9   :  { %v1888_v25 = vpop.eup %1887 }
0x1fca   :  { %1322 = vrot.lane.b32.xlu1 %v1888_v25, %s1994_s18 }
0x1fce   :  { %1387 = vrot.lane.b32.xlu1 %v1319_v23, %s2006_s13 }
0x203c   :  { %v1323_v26 = vpop.permute.xlu1 %1322 }
0x203d   :  { %v1325_v28 = vmul.f32 %v1323_v26, %v1297_v7  ;;  %v1575_v7 = vld [vmem:[#allocation9 + $0x20] ss:$0 sm:$0xff] }
0x203f   :  { %v1326_v29 = vpack.c.bf16 %v1325_v28, %v1325_v28 }
0x2040   :  { %v1388_v42 = vpop.permute.xlu1 %1387 }
0x2041   :  { %1328 = vrot.lane.b32.xlu0 %v1326_v29, %s2006_s13 }
0x20b3   :  { %v1329_v30 = vpop.permute.xlu0 %1328 }
0x20b4   :  { %1744 = vmatmul.mubr.msk.bf16.vlgmr.msra.gmra.mxu0 %vm101_vm2, %v1329_v30 }
0x2174   :  { %v1367_v31 = vpop.f32.mrf.mxu0 }
0x2175   :  { %v1373_v32 = vadd.f32 %v1367_v31, %v1249_v5 }
0x2176   :  { %v1745_v33 = vpop.f32.mrf.mxu0 }
0x2177   :  { %1889 = vtanh.f32 %v1373_v32  ;;  %v1574_v34 = vmul.f32 -1.442695, %v1373_v32 }
0x2178   :  { %v1370_v35 = vpop.f32.mrf.mxu0 }
0x2179   :  { %1891 = vpow2.f32 %v1574_v34 }
0x217a   :  { %v1746_v36 = vpop.f32.mrf.mxu0 }
0x2184   :  { %v1890_v37 = vpop.eup %1889 }
0x2185   :  { %1382 = vrot.lane.b32.xlu0 %v1890_v37, %s2006_s13 }
0x2186   :  { %v1892_v38 = vpop.eup %1891 }
0x2187   :  { %v1378_v39 = vadd.f32 1.0, %v1892_v38 }
0x2189   :  { %1893 = vrcp.f32 %v1378_v39 }
0x2196   :  { %v1894_v41 = vpop.eup %1893 }
0x2197   :  { %v1390_v43 = vmul.f32 %v1894_v41, %v1388_v42 }
0x2199   :  { %1392 = vrot.lane.b32.xlu1 %v1390_v43, %s2007_s14 }
0x21f7   :  { %v1383_v44 = vpop.permute.xlu0 %1382 }
0x21f8   :  { %v1385_v45 = vmul.f32 %v1894_v41, %v1383_v44 }
0x220b   :  { %v1393_v46 = vpop.permute.xlu1 %1392 }
0x220c   :  { %v1395_v47 = vadd.f32 %v1393_v46, %v1385_v45 }
0x220e   :  { %1895 = vtanh.f32 %v1395_v47 }
0x221b   :  { %v1896_v53 = vpop.eup %1895 }
0x221c   :  { %1398 = vrot.lane.b32.xlu0 %v1896_v53, %s1994_s18 }
0x2220   :  { %178 = vrot.lane.b32.xlu0 %v177_v56, %s2006_s13 }
0x2224   :  { %356 = vrot.lane.b32.xlu0 %v355_v59, %s1994_s18 }
0x2228   :  { %534 = vrot.lane.b32.xlu0 %v533_v24, %s2007_s14 }
0x228e   :  { %v1399_v60 = vpop.permute.xlu0 %1398 }
0x228f   :  { %v1401_v62 = vmul.f32 %v1399_v60, %v1373_v32 }
0x2291   :  { %1413 = vrot.lane.b32.xlu1 %v1401_v62, %s2006_s13 }
0x2292   :  { %v179_v63 = vpop.permute.xlu0 %178 }
0x2293   :  { %182 = vst.msk [vmem:[#allocation10] sm:$0x3] %vm181_vm3, %v179_v63 }
0x2295   :  { %879 = vrot.lane.b32.xlu1 %v878_v3, %s2006_s13 }
0x2296   :  { %v357_v1 = vpop.permute.xlu0 %356 }
0x2297   :  { %360 = vst.msk [vmem:[#allocation10] sm:$0x3] %vm359_vm4, %v357_v1 }
0x2299   :  { %1056 = vrot.lane.b32.xlu1 %v1055_v8, %s1994_s18  ;;  %s2009_s18 = smov [#allocation10]  }
0x229a   :  { %v535_v54 = vpop.permute.xlu0 %534  ;;  %s1494_s13 = sshll.u32 %s2009_s18, 4  ;;  %s1495_s13 = int_to_ptr.vmem [resolvable:$true] %s1494_s13 }
0x229b   :  { %538 = vst.msk [vmem:[#allocation10] sm:$0x3] %vm537_vm5, %v535_v54  ;;  %p1970_p2 = scmp.lt.s32.totalorder %s1495_s13, %s1495_s13 }
0x229c   :  { %705 = vst.msk [vmem:[#allocation10] sm:$0x3] %vm704_vm6, %v2165_v40 }
0x229d   :  { %1233 = vrot.lane.b32.xlu1 %v1232_v4, %s2007_s14  ;;  %s1965_s14 = scalar_lea.vmem %s1495_s13, 96 }
0x229e   :  { %p1966_p1 = scmp.ne.s32.totalorder %s1495_s13, %s1965_s14  ;;  %p1971_p3 = scmp.lt.s32.totalorder %s1965_s14, %s1965_s14 }
0x22a0   :  { %p1972_p4 = por %p1971_p3, %p1970_p2 }
0x22a2   :  { %p1973_p5 = pnand %p1972_p4, %p1966_p1 }
0x2303   :  { %v1414_v27 = vpop.permute.xlu1 %1413 }
0x2304   :  { %1756 = vmatmul.mubr.msk.f32.vlgmr.msra.gmra.mxu1 %vm101_vm2, %v1414_v27 }
0x2307   :  { %v880_v5 = vpop.permute.xlu1 %879 }
0x2308   :  { %882 = vst.msk [vmem:[#allocation10 + $0x2] sm:$0x3] %vm181_vm3, %v880_v5 }
0x230b   :  { %v1057_v6 = vpop.permute.xlu1 %1056 }
0x230c   :  { %1059 = vst.msk [vmem:[#allocation10 + $0x2] sm:$0x3] %vm359_vm4, %v1057_v6 }
0x230f   :  { %v1234_v14 = vpop.permute.xlu1 %1233 }
0x2310   :  { %1236 = vst.msk [vmem:[#allocation10 + $0x2] sm:$0x3] %vm537_vm5, %v1234_v14 }
0x2311   :  { %1402 = vst.msk [vmem:[#allocation10 + $0x2] sm:$0x3] %vm704_vm6, %v1401_v62 }
0x23c4   :  { %v1483_v61 = vpop.f32.mrf.mxu1 }
0x23c5   :  { %v1484_v9 = vadd.f32 %v1575_v7, %v1483_v61 }
0x23c6   :  { %v1757_v40 = vpop.f32.mrf.mxu1 }
0x23c7   :  { %1487 = vst [vmem:[#allocation10 + $0x4] sm:$0x3] %v1484_v9 }
0x23c8   :  { %1976 = shalt.err (!%p1973_p5)
}
0x23c9   :  { %1497 = dma.vmem_to_hbm [thread:$0]  %s1495_s13, 96, %s2298_s4, [#allocation4]  }
0x23ca   :  { %1991 = dma.done.wait [#allocation4], 96  }
0x23cb   :  { %1992 = vsyncadd [#allocation4], 4294967200 }
0x23cc   :  { %1501 = vsyncpa [#allocation3], 1 }
0x23cd   :  { %1502 = vsyncpa [#allocation8], 1 }
0x23ce   :  { %1503 = vsyncpa [#allocation4], 1 }
0x23cf   :  { %1504 = vsyncpa [#allocation5], 1 }

</bundles_post_ra>
